<compile_context>
chip_gen: v5e
topology: v5e:2x2
jax: 0.10.0
libtpu: 0.0.40
codegen_flags: <defaults>
</compile_context>

<pallas_src>
import functools

import jax
import jax.numpy as jnp
from jax.experimental import pallas as pl
from jax.experimental.pallas import tpu as pltpu


# ----------------------------- Pallas kernel ------------------------------ #
def _decoder_kernel(z_ref,
                    w0_ref, b0_ref,
                    w1_ref, b1_ref,
                    w2_ref, b2_ref,
                    out_ref,
                    *, compute_dtype, act_dtype):
    """Fused 3-layer MLP: (Linear -> SiLU) x 2 -> Linear.

    Matmuls run on the MXU with bf16 operands and f32 accumulation; the bias
    add stays f32; SiLU runs in `act_dtype` (bf16 on v6e/v7x, f32 on v5e).
    The final store is f32 (matches the PyTorch module's output dtype).
    """
    # In-kernel cast: z arrives f32 from HBM, cast to bf16 on the VPU
    # (avoids a separate wrapper-side HBM read+write pass).
    h = z_ref[...].astype(compute_dtype)

    # Layer 0: Linear + SiLU   (dropout = identity in eval mode)
    h = jnp.dot(h, w0_ref[...], preferred_element_type=jnp.float32) + b0_ref[...]
    h = h.astype(act_dtype)
    h = h * jax.nn.sigmoid(h)
    h = h.astype(compute_dtype)

    # Layer 1: Linear + SiLU
    h = jnp.dot(h, w1_ref[...], preferred_element_type=jnp.float32) + b1_ref[...]
    h = h.astype(act_dtype)
    h = h * jax.nn.sigmoid(h)
    h = h.astype(compute_dtype)

    # Layer 2 (final): Linear only; store f32 straight from the f32 accumulator.
    out_ref[...] = (jnp.dot(h, w2_ref[...], preferred_element_type=jnp.float32)
                    + b2_ref[...]).astype(out_ref.dtype)


# ------------------------------ Host wrapper ------------------------------ #
# ~1 MiB f32 in / 0.5 MiB f32 out per tile at these widths; VMEM is a non-issue
# on v5e/v6e (128 MiB) and v7x (64 MiB), so no vmem_limit_bytes override needed.
_MAX_BATCH_TILE = 8192


def _default_activation_dtype():
    """bf16 SiLU on bf16-native VPU/EUP chips (v6e/v7x); f32 on older chips."""
    try:
        kind = jax.devices()[0].device_kind.lower()
    except Exception:  # detection failure -> safe everywhere
        return jnp.float32
    if any(v in kind for v in ("v2", "v3", "v4", "v5")):
        return jnp.float32   # no bf16 VPU/EUP on these generations
    return jnp.bfloat16      # v6e / v7x


def prepare_decoder_params(params, *, compute_dtype=jnp.bfloat16,
                           lane_dense_out=False):
    """One-time parameter prep (call once, reuse across forward calls).

    params: list of 3 (W_T, b) pairs; W_T shape (in, out), b shape (1, out), f32.
    Casts weights to `compute_dtype` (bf16 MXU operands); biases stay f32 and
    are added after the f32 accumulation. With lane_dense_out=True the final
    W/b are zero-padded to 128 output lanes so the kernel's store is unmasked
    (lane-dense); the wrapper slices the real columns back afterwards.
    """
    assert len(params) == 3, "this fused kernel is specialized for 3 linear layers"
    (w0, b0), (w1, b1), (w2, b2) = params
    d_out = w2.shape[1]
    if lane_dense_out and d_out < 128:
        pad = 128 - d_out
        w2 = jnp.pad(w2, ((0, 0), (0, pad)))
        b2 = jnp.pad(b2, ((0, 0), (0, pad)))
    return dict(
        w0=jnp.asarray(w0, compute_dtype), b0=jnp.asarray(b0, jnp.float32),
        w1=jnp.asarray(w1, compute_dtype), b1=jnp.asarray(b1, jnp.float32),
        w2=jnp.asarray(w2, compute_dtype), b2=jnp.asarray(b2, jnp.float32),
        d_out=d_out,
        compute_dtype=compute_dtype,
        lane_dense_out=bool(lane_dense_out and d_out < 128),
    )


def _decoder_call(z, p, act_dtype, tb):
    """One pallas_call over a batch that is an exact multiple of `tb`."""
    B, d_in = z.shape
    d_store = p["w2"].shape[1]

    kernel = functools.partial(_decoder_kernel,
                               compute_dtype=p["compute_dtype"],
                               act_dtype=act_dtype)

    z_map = lambda i: (i, 0)
    const_map = lambda i: (0, 0)   # resident weights/biases: fetched once

    in_specs = [
        pl.BlockSpec((tb, d_in), z_map),
        pl.BlockSpec(p["w0"].shape, const_map),
        pl.BlockSpec(p["b0"].shape, const_map),
        pl.BlockSpec(p["w1"].shape, const_map),
        pl.BlockSpec(p["b1"].shape, const_map),
        pl.BlockSpec(p["w2"].shape, const_map),
        pl.BlockSpec(p["b2"].shape, const_map),
    ]
    out_spec = pl.BlockSpec((tb, d_store), z_map)

    return pl.pallas_call(
        kernel,
        out_shape=jax.ShapeDtypeStruct((B, d_store), jnp.float32),
        grid_spec=pltpu.PrefetchScalarGridSpec(
            num_scalar_prefetch=0,
            grid=(B // tb,),
            in_specs=in_specs,
            out_specs=out_spec,
        ),
        # With a single step this is a no-op; with multiple steps (only for
        # B > _MAX_BATCH_TILE) v7x shards the batch axis across its 2 TCs.
        compiler_params=pltpu.CompilerParams(
            dimension_semantics=("parallel",)),
    )(z, p["w0"], p["b0"], p["w1"], p["b1"], p["w2"], p["b2"])


def decoder_forward(z, prepped_params, *, activation_dtype=None,
                    max_batch_tile=_MAX_BATCH_TILE):
    """Run the fused decoder kernel.

    z:              (B, d_in) float32 array (cast to bf16 inside the kernel).
    prepped_params: output of prepare_decoder_params (cast once, reused).
    Returns (B, d_out) float32, matching the PyTorch module's output dtype.
    """
    B = z.shape[0]
    act_dtype = _default_activation_dtype() if activation_dtype is None else activation_dtype

    if B <= max_batch_tile:
        # Single grid step: no per-step overhead, no padding, no output slice.
        out = _decoder_call(z, prepped_params, act_dtype, tb=B)
    else:
        # Large batch: full tiles in one multi-step call; ragged tail (if any)
        # handled by a small second call instead of a pad + slice pass.
        n_full = B // max_batch_tile
        bulk_rows = n_full * max_batch_tile
        out = _decoder_call(z[:bulk_rows], prepped_params, act_dtype,
                            tb=max_batch_tile)
        rem = B - bulk_rows
        if rem:
            tail = _decoder_call(z[bulk_rows:], prepped_params, act_dtype, tb=rem)
            out = jnp.concatenate([out, tail], axis=0)

    if prepped_params["lane_dense_out"]:
        out = out[:, : prepped_params["d_out"]]
    return out


# ------------------------- Parameter construction ------------------------- #
def init_decoder_params(key, layers):
    """Deterministic init matching the nn.Linear shapes of the PyTorch module.

    PyTorch Linear stores weight (out, in); we generate it that way and then
    transpose so the kernel does h @ W_T + b  ==  x @ weight.T + bias.
    """
    params = []
    for d_in, d_out in zip(layers, layers[1:]):
        kw, kb, key = jax.random.split(key, 3)
        bound = 1.0 / jnp.sqrt(d_in)
        w = jax.random.uniform(kw, (d_out, d_in), jnp.float32, -bound, bound)
        b = jax.random.uniform(kb, (d_out,), jnp.float32, -bound, bound)
        params.append((jnp.asarray(w.T), b.reshape(1, d_out)))
    return params


# --------------------------- Pure-JAX reference ---------------------------- #
def decoder_reference(z, params):
    h = z
    n = len(params)
    for i, (w, b) in enumerate(params):
        h = h @ w + b
        if i < n - 1:
            h = h * jax.nn.sigmoid(h)  # SiLU (dropout identity in eval)
    return h


# ---------------------------------- Main ----------------------------------- #
if __name__ == "__main__":
    layers = (32, 64, 48, 16)   # Decoder(layers=[32, 64, 48, 16], dropout=0.1)
    batch = 256

    key = jax.random.PRNGKey(0)
    kz, kp = jax.random.split(key)
    z = jax.random.normal(kz, (batch, layers[0]), dtype=jnp.float32)
    params = init_decoder_params(kp, layers)

    ref = decoder_reference(z, params)   # f32 reference

    # Default path: single grid step (B <= tile cap), masked 16-lane store.
    prepped = prepare_decoder_params(params)
    out = jax.block_until_ready(decoder_forward(z, prepped))
    assert out.shape == (batch, layers[-1]) and out.dtype == jnp.float32
    # bf16 matmul operands (f32 accumulation) -> relaxed tolerance vs f32 ref.
    assert jnp.allclose(out, ref, atol=5e-2, rtol=5e-2), "kernel mismatch vs reference"

    # Lane-dense output variant: W2/b2 zero-padded to 128 lanes, unmasked store,
    # slice back outside the kernel.
    prepped_ld = prepare_decoder_params(params, lane_dense_out=True)
    out_ld = jax.block_until_ready(decoder_forward(z, prepped_ld))
    assert out_ld.shape == (batch, layers[-1])
    assert jnp.allclose(out_ld, ref, atol=5e-2, rtol=5e-2), \
        "lane-dense kernel mismatch vs reference"

    print("KERNEL_OK")
</pallas_src>

<mosaic_0001>
module attributes {stable_mosaic.version = 11 : i64} {
  func.func @_decoder_kernel(%arg0: i32, %arg1: memref<256x32xf32, #tpu.memory_space<vmem>>, %arg2: memref<32x64xbf16, #tpu.memory_space<vmem>>, %arg3: memref<1x64xf32, #tpu.memory_space<vmem>>, %arg4: memref<64x48xbf16, #tpu.memory_space<vmem>>, %arg5: memref<1x48xf32, #tpu.memory_space<vmem>>, %arg6: memref<48x16xbf16, #tpu.memory_space<vmem>>, %arg7: memref<1x16xf32, #tpu.memory_space<vmem>>, %arg8: memref<256x16xf32, #tpu.memory_space<vmem>>) attributes {dimension_semantics = [#tpu.dimension_semantics<parallel>], iteration_bounds = array<i64: 1>, scalar_prefetch = 0 : i64, scratch_operands = 0 : i64, tpu.core_type = #tpu.core_type<tc>, window_params = [{transform_indices = @transform_0, window_bounds = array<i64: 256, 32>}, {pipeline_mode = #tpu.pipeline_mode<synchronous>, transform_indices = @transform_1, window_bounds = array<i64: 32, 64>}, {pipeline_mode = #tpu.pipeline_mode<synchronous>, transform_indices = @transform_2, window_bounds = array<i64: 1, 64>}, {pipeline_mode = #tpu.pipeline_mode<synchronous>, transform_indices = @transform_3, window_bounds = array<i64: 64, 48>}, {pipeline_mode = #tpu.pipeline_mode<synchronous>, transform_indices = @transform_4, window_bounds = array<i64: 1, 48>}, {pipeline_mode = #tpu.pipeline_mode<synchronous>, transform_indices = @transform_5, window_bounds = array<i64: 48, 16>}, {pipeline_mode = #tpu.pipeline_mode<synchronous>, transform_indices = @transform_6, window_bounds = array<i64: 1, 16>}, {transform_indices = @transform_7, window_bounds = array<i64: 256, 16>}]} {
    %c0 = arith.constant 0 : index
    %c0_0 = arith.constant 0 : index
    %0 = vector.load %arg1[%c0, %c0_0] : memref<256x32xf32, #tpu.memory_space<vmem>>, vector<256x32xf32>
    %1 = arith.truncf %0 : vector<256x32xf32> to vector<256x32xbf16>
    %c0_1 = arith.constant 0 : index
    %c0_2 = arith.constant 0 : index
    %2 = vector.load %arg2[%c0_1, %c0_2] : memref<32x64xbf16, #tpu.memory_space<vmem>>, vector<32x64xbf16>
    %cst = arith.constant dense<0.000000e+00> : vector<256x64xf32>
    %3 = tpu.matmul %1, %2, %cst {dimension_numbers = #tpu.dot_dimension_numbers<[1], [0], [0], [1], [0, 0, 1, 1], [], []>} : vector<256x32xbf16>, vector<32x64xbf16>, vector<256x64xf32> -> vector<256x64xf32>
    %c0_3 = arith.constant 0 : index
    %c0_4 = arith.constant 0 : index
    %4 = vector.load %arg3[%c0_3, %c0_4] : memref<1x64xf32, #tpu.memory_space<vmem>>, vector<1x64xf32>
    %5 = vector.broadcast %4 : vector<1x64xf32> to vector<256x64xf32>
    %6 = arith.addf %3, %5 : vector<256x64xf32>
    %7 = arith.truncf %6 : vector<256x64xf32> to vector<256x64xbf16>
    %8 = arith.negf %7 : vector<256x64xbf16>
    %9 = math.exp %8 : vector<256x64xbf16>
    %cst_5 = arith.constant 1.000000e+00 : bf16
    %10 = vector.broadcast %cst_5 : bf16 to vector<256x64xbf16>
    %11 = arith.addf %10, %9 : vector<256x64xbf16>
    %12 = arith.divf %10, %11 : vector<256x64xbf16>
    %13 = arith.mulf %7, %12 : vector<256x64xbf16>
    %c0_6 = arith.constant 0 : index
    %c0_7 = arith.constant 0 : index
    %14 = vector.load %arg4[%c0_6, %c0_7] : memref<64x48xbf16, #tpu.memory_space<vmem>>, vector<64x48xbf16>
    %cst_8 = arith.constant dense<0.000000e+00> : vector<256x48xf32>
    %15 = tpu.matmul %13, %14, %cst_8 {dimension_numbers = #tpu.dot_dimension_numbers<[1], [0], [0], [1], [0, 0, 1, 1], [], []>} : vector<256x64xbf16>, vector<64x48xbf16>, vector<256x48xf32> -> vector<256x48xf32>
    %c0_9 = arith.constant 0 : index
    %c0_10 = arith.constant 0 : index
    %16 = vector.load %arg5[%c0_9, %c0_10] : memref<1x48xf32, #tpu.memory_space<vmem>>, vector<1x48xf32>
    %17 = vector.broadcast %16 : vector<1x48xf32> to vector<256x48xf32>
    %18 = arith.addf %15, %17 : vector<256x48xf32>
    %19 = arith.truncf %18 : vector<256x48xf32> to vector<256x48xbf16>
    %20 = arith.negf %19 : vector<256x48xbf16>
    %21 = math.exp %20 : vector<256x48xbf16>
    %cst_11 = arith.constant 1.000000e+00 : bf16
    %22 = vector.broadcast %cst_11 : bf16 to vector<256x48xbf16>
    %23 = arith.addf %22, %21 : vector<256x48xbf16>
    %24 = arith.divf %22, %23 : vector<256x48xbf16>
    %25 = arith.mulf %19, %24 : vector<256x48xbf16>
    %c0_12 = arith.constant 0 : index
    %c0_13 = arith.constant 0 : index
    %26 = vector.load %arg6[%c0_12, %c0_13] : memref<48x16xbf16, #tpu.memory_space<vmem>>, vector<48x16xbf16>
    %cst_14 = arith.constant dense<0.000000e+00> : vector<256x16xf32>
    %27 = tpu.matmul %25, %26, %cst_14 {dimension_numbers = #tpu.dot_dimension_numbers<[1], [0], [0], [1], [0, 0, 1, 1], [], []>} : vector<256x48xbf16>, vector<48x16xbf16>, vector<256x16xf32> -> vector<256x16xf32>
    %c0_15 = arith.constant 0 : index
    %c0_16 = arith.constant 0 : index
    %28 = vector.load %arg7[%c0_15, %c0_16] : memref<1x16xf32, #tpu.memory_space<vmem>>, vector<1x16xf32>
    %29 = vector.broadcast %28 : vector<1x16xf32> to vector<256x16xf32>
    %30 = arith.addf %27, %29 : vector<256x16xf32>
    %c0_17 = arith.constant 0 : index
    %c0_18 = arith.constant 0 : index
    %31 = vector.load %arg8[%c0_17, %c0_18] : memref<256x16xf32, #tpu.memory_space<vmem>>, vector<256x16xf32>
    tpu.vector_store %arg8[%c0_17, %c0_18], %30 {strides = array<i32>} : memref<256x16xf32, #tpu.memory_space<vmem>>, vector<256x16xf32>,
    return
  }
  func.func @transform_0(%arg0: i32) -> (i32, i32) {
    %c0_i32 = arith.constant 0 : i32
    %c0_i32_0 = arith.constant 0 : i32
    return %arg0, %c0_i32 : i32, i32
  }
  func.func @transform_1(%arg0: i32) -> (i32, i32) {
    %c0_i32 = arith.constant 0 : i32
    %c0_i32_0 = arith.constant 0 : i32
    %c0_i32_1 = arith.constant 0 : i32
    return %c0_i32, %c0_i32_0 : i32, i32
  }
  func.func @transform_2(%arg0: i32) -> (i32, i32) {
    %c0_i32 = arith.constant 0 : i32
    %c0_i32_0 = arith.constant 0 : i32
    %c0_i32_1 = arith.constant 0 : i32
    return %c0_i32, %c0_i32_0 : i32, i32
  }
  func.func @transform_3(%arg0: i32) -> (i32, i32) {
    %c0_i32 = arith.constant 0 : i32
    %c0_i32_0 = arith.constant 0 : i32
    %c0_i32_1 = arith.constant 0 : i32
    return %c0_i32, %c0_i32_0 : i32, i32
  }
  func.func @transform_4(%arg0: i32) -> (i32, i32) {
    %c0_i32 = arith.constant 0 : i32
    %c0_i32_0 = arith.constant 0 : i32
    %c0_i32_1 = arith.constant 0 : i32
    return %c0_i32, %c0_i32_0 : i32, i32
  }
  func.func @transform_5(%arg0: i32) -> (i32, i32) {
    %c0_i32 = arith.constant 0 : i32
    %c0_i32_0 = arith.constant 0 : i32
    %c0_i32_1 = arith.constant 0 : i32
    return %c0_i32, %c0_i32_0 : i32, i32
  }
  func.func @transform_6(%arg0: i32) -> (i32, i32) {
    %c0_i32 = arith.constant 0 : i32
    %c0_i32_0 = arith.constant 0 : i32
    %c0_i32_1 = arith.constant 0 : i32
    return %c0_i32, %c0_i32_0 : i32, i32
  }
  func.func @transform_7(%arg0: i32) -> (i32, i32) {
    %c0_i32 = arith.constant 0 : i32
    %c0_i32_0 = arith.constant 0 : i32
    return %arg0, %c0_i32 : i32, i32
  }
}

</mosaic_0001>

<bundles_post_ra>
// kernel: tpu_custom_call.1
= control target key start
LH: loop header
LB: loop body
LE: loop exit
PB: predicated region body
PF: predicated region fallthrough
CT: control target
= control target key end

     0   :  { %vm96_vm0 = vcmask 261120   ;;  %vm896_vm1 = vcmask 523264   ;;  %vm1686_vm2 = vcmask 392192   ;;  %vm1824_vm3 = vcmask 130048   ;;  %s3275_s1 = inlined_call_operand.vmem [shape: bf16[32,64], index: 1, kind: input, shape index: {}]   ;;  %s3276_s0 = inlined_call_operand.vmem [shape: f32[256,32], index: 0, kind: input, shape index: {}]   ;;  %s3277_s2 = inlined_call_operand.vmem [shape: f32[1,64], index: 2, kind: input, shape index: {}]   ;;  %s3278_s3 = inlined_call_operand.vmem [shape: bf16[64,48], index: 3, kind: input, shape index: {}]   ;;  %s3279_s4 = inlined_call_operand.vmem [shape: f32[1,48], index: 4, kind: input, shape index: {}]   ;;  %s3280_s5 = inlined_call_operand.vmem [shape: bf16[48,16], index: 5, kind: input, shape index: {}]   ;;  %s3281_s6 = inlined_call_operand.vmem [shape: f32[1,16], index: 6, kind: input, shape index: {}]   ;;  %s3282_s7 = inlined_call_operand.vmem [shape: f32[256,16], index: 7, kind: output, shape index: {}]  }
   0x1   :  { %v1946_v0 = vld [vmem:[%s3275_s1 + $0x8] sm:$0xff]  ;;  %v1945_v1 = vld [vmem:[%s3275_s1] sm:$0xff]  ;;  %v30_v5 = vld [vmem:[%s3276_s0 + $0x10] sm:$0xff] }
   0x2   :  { %151 = vmatpush.bf16.msra.mxu0 %v1946_v0  ;;  %v28_v2 = vld [vmem:[%s3276_s0] sm:$0xff]  ;;  %v29_v3 = vld [vmem:[%s3276_s0 + $0x8] sm:$0xff]  ;;  %1954 = vmatpush.bf16.msra.mxu3 %v1946_v0  ;;  %v31_v6 = vld [vmem:[%s3276_s0 + $0x18] sm:$0xff] }
   0x3   :  { %v60_v4 = vpack.c.bf16 %v29_v3, %v28_v2  ;;  %v61_v7 = vpack.c.bf16 %v31_v6, %v30_v5  ;;  %v32_v8 = vld [vmem:[%s3276_s0 + $0x20] sm:$0xff]  ;;  %v33_v9 = vld [vmem:[%s3276_s0 + $0x28] sm:$0xff]  ;;  %v34_v11 = vld [vmem:[%s3276_s0 + $0x30] sm:$0xff] }
   0x4   :  { %v62_v10 = vpack.c.bf16 %v33_v9, %v32_v8  ;;  %v35_v12 = vld [vmem:[%s3276_s0 + $0x38] sm:$0xff]  ;;  %v36_v14 = vld [vmem:[%s3276_s0 + $0x40] sm:$0xff]  ;;  %v37_v15 = vld [vmem:[%s3276_s0 + $0x48] sm:$0xff] }
   0x5   :  { %v63_v13 = vpack.c.bf16 %v35_v12, %v34_v11  ;;  %v64_v16 = vpack.c.bf16 %v37_v15, %v36_v14  ;;  %v38_v17 = vld [vmem:[%s3276_s0 + $0x50] sm:$0xff]  ;;  %v39_v18 = vld [vmem:[%s3276_s0 + $0x58] sm:$0xff]  ;;  %v40_v20 = vld [vmem:[%s3276_s0 + $0x60] sm:$0xff] }
   0x6   :  { %152 = vmatpush.bf16.msra.mxu0 %v1945_v1  ;;  %1955 = vmatpush.bf16.msra.mxu3 %v1945_v1  ;;  %v65_v19 = vpack.c.bf16 %v39_v18, %v38_v17  ;;  %v41_v21 = vld [vmem:[%s3276_s0 + $0x68] sm:$0xff]  ;;  %v42_v23 = vld [vmem:[%s3276_s0 + $0x70] sm:$0xff]  ;;  %v43_v24 = vld [vmem:[%s3276_s0 + $0x78] sm:$0xff] }
   0x7   :  { %v66_v22 = vpack.c.bf16 %v41_v21, %v40_v20  ;;  %v67_v25 = vpack.c.bf16 %v43_v24, %v42_v23  ;;  %v44_v26 = vld [vmem:[%s3276_s0 + $0x80] sm:$0xff]  ;;  %v45_v27 = vld [vmem:[%s3276_s0 + $0x88] sm:$0xff]  ;;  %v54_v32 = vld [vmem:[%s3276_s0 + $0xd0] sm:$0xff] }
   0x8   :  { %v2465_v28 = vld [vmem:[%s3277_s2] ss:$0 sm:$0xff]  ;;  %v68_v29 = vpack.c.bf16 %v45_v27, %v44_v26  ;;  %v55_v33 = vld [vmem:[%s3276_s0 + $0xd8] sm:$0xff]  ;;  %v1949_v42 = vld [vmem:[%s3278_s3 + $0x10] sm:$0xff] }
   0x9   :  { %1869 = vmatmul.msk.bf16.vlgmr.msra.gmra.mxu0 %vm96_vm0, %v60_v4  ;;  %v73_v35 = vpack.c.bf16 %v55_v33, %v54_v32  ;;  %v1950_v37 = vld [vmem:[%s3278_s3 + $0x18] sm:$0xff]  ;;  %v46_v44 = vld [vmem:[%s3276_s0 + $0x90] sm:$0xff]  ;;  %v1948_v47 = vld [vmem:[%s3278_s3 + $0x8] sm:$0xff] }
   0xa   :  { %949 = vmatpush.bf16.msra.mxu1 %v1950_v37  ;;  %1956 = vmatpush.bf16.msrb.mxu3 %v1950_v37  ;;  %v47_v45 = vld [vmem:[%s3276_s0 + $0x98] sm:$0xff]  ;;  %v1947_v54 = vld [vmem:[%s3278_s3] sm:$0xff]  ;;  %v57_v57 = vld [vmem:[%s3276_s0 + $0xe8] sm:$0xff] }
   0xb   :  { %1882 = vmatmul.msk.bf16.vlgmr.msra.gmra.mxu3 %vm96_vm0, %v73_v35  ;;  %v69_v49 = vpack.c.bf16 %v47_v45, %v46_v44  ;;  %v56_v56 = vld [vmem:[%s3276_s0 + $0xe0] sm:$0xff]  ;;  %v49_v11 = vld [vmem:[%s3276_s0 + $0xa8] sm:$0xff]  ;;  %v58_v24 = vld [vmem:[%s3276_s0 + $0xf0] sm:$0xff] }
   0xc   :  { %v74_v59 = vpack.c.bf16 %v57_v57, %v56_v56  ;;  %v50_v56 = vld [vmem:[%s3276_s0 + $0xb0] sm:$0xff]  ;;  %v51_v57 = vld [vmem:[%s3276_s0 + $0xb8] sm:$0xff] }
   0xe   :  { %950 = vmatpush.bf16.msra.mxu1 %v1949_v42  ;;  %1957 = vmatpush.bf16.msrb.mxu3 %v1949_v42 }
  0x12   :  { %951 = vmatpush.bf16.msra.mxu1 %v1948_v47  ;;  %1958 = vmatpush.bf16.msrb.mxu3 %v1948_v47 }
  0x16   :  { %952 = vmatpush.bf16.msra.mxu1 %v1947_v54  ;;  %1959 = vmatpush.bf16.msrb.mxu3 %v1947_v54 }
  0x19   :  { %1870 = vmatmul.msk.bf16.gmra.mxu0 %vm96_vm0, %v61_v7 }
  0x1b   :  { %1883 = vmatmul.msk.bf16.gmra.mxu3 %vm96_vm0, %v74_v59 }
  0x29   :  { %1871 = vmatmul.msk.bf16.gmra.mxu0 %vm96_vm0, %v62_v10  ;;  %v48_v10 = vld [vmem:[%s3276_s0 + $0xa0] sm:$0xff] }
  0x2a   :  { %v70_v15 = vpack.c.bf16 %v49_v11, %v48_v10 }
  0x39   :  { %1872 = vmatmul.msk.bf16.gmra.mxu0 %vm96_vm0, %v63_v13 }
  0x49   :  { %1873 = vmatmul.msk.bf16.gmra.mxu0 %vm96_vm0, %v64_v16 }
  0x59   :  { %1874 = vmatmul.msk.bf16.gmra.mxu0 %vm96_vm0, %v65_v19  ;;  %v2353_v19 = vmov 1065369472  }
  0x5a   :  { %v2523_v20 = vunpack.c.h.bf16 %v2353_v19  ;;  %v2525_v21 = vunpack.c.l.bf16 %v2353_v19 }
  0x69   :  { %1875 = vmatmul.msk.bf16.gmra.mxu0 %vm96_vm0, %v66_v22 }
  0x79   :  { %1876 = vmatmul.msk.bf16.gmra.mxu0 %vm96_vm0, %v67_v25 }
  0x86   :  { %v154_v30 = vpop.f32.mrf.mxu0 }
  0x87   :  { %v155_v31 = vadd.f32 %v2465_v28, %v154_v30  ;;  %v59_v30 = vld [vmem:[%s3276_s0 + $0xf8] sm:$0xff] }
  0x88   :  { %v75_v33 = vpack.c.bf16 %v59_v30, %v58_v24 }
  0x89   :  { %v2474_v34 = vpack.c.bf16 %v155_v31, %v155_v31  ;;  %1877 = vmatmul.msk.bf16.gmra.mxu0 %vm96_vm0, %v68_v29 }
  0x8a   :  { %1884 = vmatmul.msk.bf16.gmra.mxu3 %vm96_vm0, %v75_v33 }
  0x8b   :  { %v266_v36 = vxor.u32 2147516416, %v2474_v34 }
  0x8d   :  { %v298_v38 = vunpack.c.l.bf16 %v266_v36 }
  0x8e   :  { %v156_v39 = vpop.f32.mrf.mxu0 }
  0x8f   :  { %v330_v40 = vmul.f32 1.442695, %v298_v38  ;;  %v157_v41 = vadd.f32 %v2465_v28, %v156_v39 }
  0x91   :  { %1967 = vpow2.f32 %v330_v40  ;;  %v2486_v43 = vpack.c.bf16 %v157_v41, %v157_v41 }
  0x93   :  { %v267_v46 = vxor.u32 2147516416, %v2486_v43 }
  0x95   :  { %v299_v48 = vunpack.c.l.bf16 %v267_v46 }
  0x96   :  { %v159_v50 = vpop.f32.mrf.mxu0 }
  0x97   :  { %v1968_v51 = vpop.eup %1967  ;;  %v332_v52 = vmul.f32 1.442695, %v299_v48  ;;  %v160_v53 = vadd.f32 %v2465_v28, %v159_v50 }
  0x98   :  { %v394_v55 = vpack.c.bf16 %v1968_v51, %v1968_v51 }
  0x99   :  { %1969 = vpow2.f32 %v332_v52  ;;  %v2508_v58 = vpack.c.bf16 %v160_v53, %v160_v53  ;;  %1878 = vmatmul.msk.bf16.gmra.mxu0 %vm96_vm0, %v69_v49 }
  0x9a   :  { %v426_v60 = vunpack.c.l.bf16 %v394_v55 }
  0x9b   :  { %v268_v61 = vxor.u32 2147516416, %v2508_v58 }
  0x9c   :  { %v458_v62 = vadd.f32 1.0, %v426_v60 }
  0x9d   :  { %v300_v63 = vunpack.c.l.bf16 %v268_v61 }
  0x9e   :  { %v490_v0 = vpack.c.bf16 %v458_v62, %v458_v62  ;;  %v161_v1 = vpop.f32.mrf.mxu0 }
  0x9f   :  { %v1970_v2 = vpop.eup %1969  ;;  %v334_v3 = vmul.f32 1.442695, %v300_v63  ;;  %v162_v4 = vadd.f32 %v2465_v28, %v161_v1 }
  0xa0   :  { %v524_v5 = vunpack.c.h.bf16 %v490_v0  ;;  %v525_v6 = vunpack.c.l.bf16 %v490_v0  ;;  %v395_v7 = vpack.c.bf16 %v1970_v2, %v1970_v2  ;;  %v748_v0 = vunpack.c.l.bf16 %v2474_v34 }
  0xa1   :  { %1971 = vpow2.f32 %v334_v3  ;;  %v2514_v8 = vpack.c.bf16 %v162_v4, %v162_v4  ;;  %v71_v2 = vpack.c.bf16 %v51_v57, %v50_v56  ;;  %v749_v3 = vunpack.c.l.bf16 %v2486_v43 }
  0xa2   :  { %1973 = vrcp.f32 %v524_v5  ;;  %v427_v9 = vunpack.c.l.bf16 %v395_v7 }
  0xa3   :  { %1975 = vrcp.f32 %v525_v6  ;;  %v269_v12 = vxor.u32 2147516416, %v2514_v8 }
  0xa4   :  { %v459_v13 = vadd.f32 1.0, %v427_v9 }
  0xa5   :  { %v301_v14 = vunpack.c.l.bf16 %v269_v12 }
  0xa6   :  { %v491_v16 = vpack.c.bf16 %v459_v13, %v459_v13  ;;  %v164_v17 = vpop.f32.mrf.mxu0 }
  0xa7   :  { %v1972_v18 = vpop.eup %1971  ;;  %v336_v22 = vmul.f32 1.442695, %v301_v14  ;;  %v165_v23 = vadd.f32 %v2465_v28, %v164_v17 }
  0xa8   :  { %v1974_v25 = vpop.eup %1973  ;;  %v531_v26 = vunpack.c.h.bf16 %v491_v16  ;;  %v532_v27 = vunpack.c.l.bf16 %v491_v16  ;;  %v396_v29 = vpack.c.bf16 %v1972_v18, %v1972_v18 }
  0xa9   :  { %v1976_v31 = vpop.eup %1975  ;;  %1977 = vpow2.f32 %v336_v22  ;;  %v2534_v32 = vpack.c.bf16 %v165_v23, %v165_v23  ;;  %1879 = vmatmul.msk.bf16.gmra.mxu0 %vm96_vm0, %v70_v15  ;;  %v527_v36 = vmul.f32 %v1974_v25, %v2523_v20 }
  0xaa   :  { %1979 = vrcp.f32 %v531_v26  ;;  %v428_v35 = vunpack.c.l.bf16 %v396_v29  ;;  %v529_v37 = vmul.f32 %v1976_v31, %v2525_v21 }
  0xab   :  { %1981 = vrcp.f32 %v532_v27  ;;  %v270_v38 = vxor.u32 2147516416, %v2534_v32 }
  0xac   :  { %v460_v39 = vadd.f32 1.0, %v428_v35  ;;  %v530_v45 = vpack.c.bf16 %v527_v36, %v529_v37 }
  0xad   :  { %v302_v40 = vunpack.c.l.bf16 %v270_v38 }
  0xae   :  { %v492_v41 = vpack.c.bf16 %v460_v39, %v460_v39  ;;  %v166_v42 = vpop.f32.mrf.mxu0  ;;  %v780_v60 = vunpack.c.l.bf16 %v530_v45  ;;  %v52_v45 = vld [vmem:[%s3276_s0 + $0xc0] sm:$0xff] }
  0xaf   :  { %v1978_v44 = vpop.eup %1977  ;;  %v338_v46 = vmul.f32 1.442695, %v302_v40  ;;  %v167_v47 = vadd.f32 %v2465_v28, %v166_v42 }
  0xb0   :  { %v1980_v48 = vpop.eup %1979  ;;  %v538_v49 = vunpack.c.h.bf16 %v492_v41  ;;  %v539_v50 = vunpack.c.l.bf16 %v492_v41  ;;  %v397_v51 = vpack.c.bf16 %v1978_v44, %v1978_v44  ;;  %v812_v9 = vmul.f32 %v780_v60, %v748_v0 }
  0xb1   :  { %v1982_v52 = vpop.eup %1981  ;;  %1983 = vpow2.f32 %v338_v46  ;;  %v2542_v53 = vpack.c.bf16 %v167_v47, %v167_v47  ;;  %v534_v54 = vmul.f32 %v1980_v48, %v2523_v20  ;;  %v53_v46 = vld [vmem:[%s3276_s0 + $0xc8] sm:$0xff] }
  0xb2   :  { %1985 = vrcp.f32 %v538_v49  ;;  %v429_v55 = vunpack.c.l.bf16 %v397_v51  ;;  %v536_v59 = vmul.f32 %v1982_v52, %v2525_v21  ;;  %v750_v51 = vunpack.c.l.bf16 %v2508_v58 }
  0xb3   :  { %1987 = vrcp.f32 %v539_v50  ;;  %v271_v61 = vxor.u32 2147516416, %v2542_v53 }
  0xb4   :  { %v461_v62 = vadd.f32 1.0, %v429_v55  ;;  %v537_v63 = vpack.c.bf16 %v534_v54, %v536_v59  ;;  %v72_v54 = vpack.c.bf16 %v53_v46, %v52_v45  ;;  %v751_v55 = vunpack.c.l.bf16 %v2514_v8 }
  0xb5   :  { %v303_v1 = vunpack.c.l.bf16 %v271_v61 }
  0xb6   :  { %v493_v4 = vpack.c.bf16 %v461_v62, %v461_v62  ;;  %v169_v5 = vpop.f32.mrf.mxu0  ;;  %v781_v6 = vunpack.c.l.bf16 %v537_v63 }
  0xb7   :  { %v1984_v7 = vpop.eup %1983  ;;  %v340_v10 = vmul.f32 1.442695, %v303_v1  ;;  %v170_v11 = vadd.f32 %v2465_v28, %v169_v5 }
  0xb8   :  { %v1986_v12 = vpop.eup %1985  ;;  %v545_v13 = vunpack.c.h.bf16 %v493_v4  ;;  %v546_v14 = vunpack.c.l.bf16 %v493_v4  ;;  %v398_v15 = vpack.c.bf16 %v1984_v7, %v1984_v7  ;;  %v813_v16 = vmul.f32 %v781_v6, %v749_v3 }
  0xb9   :  { %v1988_v17 = vpop.eup %1987  ;;  %1989 = vpow2.f32 %v340_v10  ;;  %v2556_v34 = vpack.c.bf16 %v170_v11, %v170_v11  ;;  %1880 = vmatmul.msk.bf16.gmra.mxu0 %vm96_vm0, %v71_v2  ;;  %v541_v19 = vmul.f32 %v1986_v12, %v2523_v20 }
  0xba   :  { %1991 = vrcp.f32 %v545_v13  ;;  %v430_v43 = vunpack.c.l.bf16 %v398_v15  ;;  %v844_v18 = vpack.c.bf16 %v813_v16, %v812_v9  ;;  %v543_v22 = vmul.f32 %v1988_v17, %v2525_v21 }
  0xbb   :  { %1993 = vrcp.f32 %v546_v14  ;;  %v272_v23 = vxor.u32 2147516416, %v2556_v34 }
  0xbc   :  { %v462_v24 = vadd.f32 1.0, %v430_v43  ;;  %1901 = vmatmul.msk.bf16.vlgmr.msra.gmra.mxu1 %vm896_vm1, %v844_v18  ;;  %v544_v30 = vpack.c.bf16 %v541_v19, %v543_v22 }
  0xbd   :  { %v304_v25 = vunpack.c.l.bf16 %v272_v23 }
  0xbe   :  { %v494_v26 = vpack.c.bf16 %v462_v24, %v462_v24  ;;  %v171_v27 = vpop.f32.mrf.mxu0  ;;  %v782_v47 = vunpack.c.l.bf16 %v544_v30 }
  0xbf   :  { %v1990_v29 = vpop.eup %1989  ;;  %v342_v31 = vmul.f32 1.442695, %v304_v25  ;;  %v172_v33 = vadd.f32 %v2465_v28, %v171_v27 }
  0xc0   :  { %v1992_v35 = vpop.eup %1991  ;;  %v552_v36 = vunpack.c.h.bf16 %v494_v26  ;;  %v553_v37 = vunpack.c.l.bf16 %v494_v26  ;;  %v399_v38 = vpack.c.bf16 %v1990_v29, %v1990_v29  ;;  %v814_v61 = vmul.f32 %v782_v47, %v750_v51 }
  0xc1   :  { %v1994_v39 = vpop.eup %1993  ;;  %v548_v40 = vmul.f32 %v1992_v35, %v2523_v20  ;;  %1995 = vpow2.f32 %v342_v31  ;;  %v2565_v41 = vpack.c.bf16 %v172_v33, %v172_v33 }
  0xc2   :  { %v550_v42 = vmul.f32 %v1994_v39, %v2525_v21  ;;  %1997 = vrcp.f32 %v552_v36  ;;  %v431_v44 = vunpack.c.l.bf16 %v399_v38  ;;  %v752_v36 = vunpack.c.l.bf16 %v2534_v32 }
  0xc3   :  { %1999 = vrcp.f32 %v553_v37  ;;  %v273_v48 = vxor.u32 2147516416, %v2565_v41  ;;  %v753_v38 = vunpack.c.l.bf16 %v2542_v53 }
  0xc4   :  { %v551_v49 = vpack.c.bf16 %v548_v40, %v550_v42  ;;  %v463_v50 = vadd.f32 1.0, %v431_v44 }
  0xc5   :  { %v305_v52 = vunpack.c.l.bf16 %v273_v48 }
  0xc6   :  { %v783_v56 = vunpack.c.l.bf16 %v551_v49  ;;  %v495_v57 = vpack.c.bf16 %v463_v50, %v463_v50  ;;  %v174_v59 = vpop.f32.mrf.mxu0 }
  0xc7   :  { %v1996_v60 = vpop.eup %1995  ;;  %v344_v62 = vmul.f32 1.442695, %v305_v52  ;;  %v175_v63 = vadd.f32 %v2465_v28, %v174_v59 }
  0xc8   :  { %v1998_v0 = vpop.eup %1997  ;;  %v815_v1 = vmul.f32 %v783_v56, %v751_v55  ;;  %v559_v2 = vunpack.c.h.bf16 %v495_v57  ;;  %v560_v3 = vunpack.c.l.bf16 %v495_v57  ;;  %v400_v4 = vpack.c.bf16 %v1996_v60, %v1996_v60 }
  0xc9   :  { %v2000_v5 = vpop.eup %1999  ;;  %2001 = vpow2.f32 %v344_v62  ;;  %v2578_v58 = vpack.c.bf16 %v175_v63, %v175_v63  ;;  %1881 = vmatmul.msk.bf16.gmra.mxu0 %vm96_vm0, %v72_v54  ;;  %v555_v7 = vmul.f32 %v1998_v0, %v2523_v20 }
  0xca   :  { %2003 = vrcp.f32 %v559_v2  ;;  %v432_v8 = vunpack.c.l.bf16 %v400_v4  ;;  %v845_v6 = vpack.c.bf16 %v815_v1, %v814_v61  ;;  %v557_v9 = vmul.f32 %v2000_v5, %v2525_v21 }
  0xcb   :  { %2005 = vrcp.f32 %v560_v3  ;;  %v274_v10 = vxor.u32 2147516416, %v2578_v58 }
  0xcc   :  { %v464_v11 = vadd.f32 1.0, %v432_v8  ;;  %1902 = vmatmul.msk.bf16.gmra.mxu1 %vm896_vm1, %v845_v6  ;;  %v558_v16 = vpack.c.bf16 %v555_v7, %v557_v9 }
  0xcd   :  { %v306_v12 = vunpack.c.l.bf16 %v274_v10 }
  0xce   :  { %v496_v13 = vpack.c.bf16 %v464_v11, %v464_v11  ;;  %v176_v14 = vpop.f32.mrf.mxu0  ;;  %v784_v30 = vunpack.c.l.bf16 %v558_v16 }
  0xcf   :  { %v2002_v15 = vpop.eup %2001  ;;  %v346_v17 = vmul.f32 1.442695, %v306_v12  ;;  %v177_v43 = vadd.f32 %v2465_v28, %v176_v14 }
  0xd0   :  { %v2004_v18 = vpop.eup %2003  ;;  %v566_v19 = vunpack.c.h.bf16 %v496_v13  ;;  %v567_v22 = vunpack.c.l.bf16 %v496_v13  ;;  %v401_v23 = vpack.c.bf16 %v2002_v15, %v2002_v15  ;;  %v816_v45 = vmul.f32 %v784_v30, %v752_v36 }
  0xd1   :  { %v2006_v24 = vpop.eup %2005  ;;  %v562_v25 = vmul.f32 %v2004_v18, %v2523_v20  ;;  %2007 = vpow2.f32 %v346_v17  ;;  %v2587_v26 = vpack.c.bf16 %v177_v43, %v177_v43  ;;  %v754_v17 = vunpack.c.l.bf16 %v2556_v34 }
  0xd2   :  { %v564_v27 = vmul.f32 %v2006_v24, %v2525_v21  ;;  %2009 = vrcp.f32 %v566_v19  ;;  %v433_v29 = vunpack.c.l.bf16 %v401_v23  ;;  %v755_v18 = vunpack.c.l.bf16 %v2565_v41 }
  0xd3   :  { %2011 = vrcp.f32 %v567_v22  ;;  %v275_v31 = vxor.u32 2147516416, %v2587_v26 }
  0xd4   :  { %v565_v33 = vpack.c.bf16 %v562_v25, %v564_v27  ;;  %v465_v35 = vadd.f32 1.0, %v433_v29 }
  0xd5   :  { %v307_v37 = vunpack.c.l.bf16 %v275_v31 }
  0xd6   :  { %v785_v39 = vunpack.c.l.bf16 %v565_v33  ;;  %v497_v40 = vpack.c.bf16 %v465_v35, %v465_v35  ;;  %v179_v42 = vpop.f32.mrf.mxu0 }
  0xd7   :  { %v2008_v44 = vpop.eup %2007  ;;  %v348_v46 = vmul.f32 1.442695, %v307_v37  ;;  %v180_v47 = vadd.f32 %v2465_v28, %v179_v42 }
  0xd8   :  { %v2010_v48 = vpop.eup %2009  ;;  %v817_v49 = vmul.f32 %v785_v39, %v753_v38  ;;  %v573_v50 = vunpack.c.h.bf16 %v497_v40  ;;  %v574_v51 = vunpack.c.l.bf16 %v497_v40  ;;  %v402_v52 = vpack.c.bf16 %v2008_v44, %v2008_v44 }
  0xd9   :  { %v2012_v54 = vpop.eup %2011  ;;  %2013 = vpow2.f32 %v348_v46  ;;  %v2594_v55 = vpack.c.bf16 %v180_v47, %v180_v47  ;;  %v569_v56 = vmul.f32 %v2010_v48, %v2523_v20 }
  0xda   :  { %2015 = vrcp.f32 %v573_v50  ;;  %v434_v32 = vunpack.c.l.bf16 %v402_v52  ;;  %v846_v53 = vpack.c.bf16 %v817_v49, %v816_v45  ;;  %v571_v57 = vmul.f32 %v2012_v54, %v2525_v21 }
  0xdb   :  { %2017 = vrcp.f32 %v574_v51  ;;  %v276_v59 = vxor.u32 2147516416, %v2594_v55 }
  0xdc   :  { %v466_v60 = vadd.f32 1.0, %v434_v32  ;;  %1903 = vmatmul.msk.bf16.gmra.mxu1 %vm896_vm1, %v846_v53  ;;  %v572_v1 = vpack.c.bf16 %v569_v56, %v571_v57 }
  0xdd   :  { %v308_v61 = vunpack.c.l.bf16 %v276_v59 }
  0xde   :  { %v498_v62 = vpack.c.bf16 %v466_v60, %v466_v60  ;;  %v181_v63 = vpop.f32.mrf.mxu0  ;;  %v786_v13 = vunpack.c.l.bf16 %v572_v1 }
  0xdf   :  { %v2014_v0 = vpop.eup %2013  ;;  %v350_v2 = vmul.f32 1.442695, %v308_v61  ;;  %v182_v3 = vadd.f32 %v2465_v28, %v181_v63 }
  0xe0   :  { %v2016_v4 = vpop.eup %2015  ;;  %v580_v5 = vunpack.c.h.bf16 %v498_v62  ;;  %v581_v8 = vunpack.c.l.bf16 %v498_v62  ;;  %v403_v6 = vpack.c.bf16 %v2014_v0, %v2014_v0  ;;  %v818_v25 = vmul.f32 %v786_v13, %v754_v17 }
  0xe1   :  { %v2018_v7 = vpop.eup %2017  ;;  %v576_v9 = vmul.f32 %v2016_v4, %v2523_v20  ;;  %2019 = vpow2.f32 %v350_v2  ;;  %v2602_v10 = vpack.c.bf16 %v182_v3, %v182_v3  ;;  %v756_v2 = vunpack.c.l.bf16 %v2578_v58 }
  0xe2   :  { %v578_v11 = vmul.f32 %v2018_v7, %v2525_v21  ;;  %2021 = vrcp.f32 %v580_v5  ;;  %v435_v12 = vunpack.c.l.bf16 %v403_v6  ;;  %v757_v4 = vunpack.c.l.bf16 %v2587_v26 }
  0xe3   :  { %2023 = vrcp.f32 %v581_v8  ;;  %v277_v14 = vxor.u32 2147516416, %v2602_v10 }
  0xe4   :  { %v579_v15 = vpack.c.bf16 %v576_v9, %v578_v11  ;;  %v467_v16 = vadd.f32 1.0, %v435_v12 }
  0xe5   :  { %v309_v43 = vunpack.c.l.bf16 %v277_v14 }
  0xe6   :  { %v787_v19 = vunpack.c.l.bf16 %v579_v15  ;;  %v499_v22 = vpack.c.bf16 %v467_v16, %v467_v16  ;;  %v184_v23 = vpop.f32.mrf.mxu0 }
  0xe7   :  { %v2020_v24 = vpop.eup %2019  ;;  %v352_v27 = vmul.f32 1.442695, %v309_v43  ;;  %v185_v29 = vadd.f32 %v2465_v28, %v184_v23 }
  0xe8   :  { %v2022_v30 = vpop.eup %2021  ;;  %v819_v31 = vmul.f32 %v787_v19, %v755_v18  ;;  %v587_v33 = vunpack.c.h.bf16 %v499_v22  ;;  %v588_v35 = vunpack.c.l.bf16 %v499_v22  ;;  %v404_v36 = vpack.c.bf16 %v2020_v24, %v2020_v24 }
  0xe9   :  { %v2024_v37 = vpop.eup %2023  ;;  %2025 = vpow2.f32 %v352_v27  ;;  %v2609_v38 = vpack.c.bf16 %v185_v29, %v185_v29  ;;  %v583_v39 = vmul.f32 %v2022_v30, %v2523_v20 }
  0xea   :  { %2027 = vrcp.f32 %v587_v33  ;;  %v436_v34 = vunpack.c.l.bf16 %v404_v36  ;;  %v847_v41 = vpack.c.bf16 %v819_v31, %v818_v25  ;;  %v585_v40 = vmul.f32 %v2024_v37, %v2525_v21 }
  0xeb   :  { %2029 = vrcp.f32 %v588_v35  ;;  %v278_v42 = vxor.u32 2147516416, %v2609_v38 }
  0xec   :  { %v468_v44 = vadd.f32 1.0, %v436_v34  ;;  %1904 = vmatmul.msk.bf16.gmra.mxu1 %vm896_vm1, %v847_v41  ;;  %v586_v49 = vpack.c.bf16 %v583_v39, %v585_v40 }
  0xed   :  { %v310_v45 = vunpack.c.l.bf16 %v278_v42 }
  0xee   :  { %v500_v46 = vpack.c.bf16 %v468_v44, %v468_v44  ;;  %v186_v47 = vpop.f32.mrf.mxu0  ;;  %v788_v62 = vunpack.c.l.bf16 %v586_v49 }
  0xef   :  { %v2026_v48 = vpop.eup %2025  ;;  %v354_v50 = vmul.f32 1.442695, %v310_v45  ;;  %v187_v51 = vadd.f32 %v2465_v28, %v186_v47 }
  0xf0   :  { %v2028_v52 = vpop.eup %2027  ;;  %v594_v54 = vunpack.c.h.bf16 %v500_v46  ;;  %v595_v32 = vunpack.c.l.bf16 %v500_v46  ;;  %v405_v53 = vpack.c.bf16 %v2026_v48, %v2026_v48  ;;  %v820_v9 = vmul.f32 %v788_v62, %v756_v2 }
  0xf1   :  { %v2030_v56 = vpop.eup %2029  ;;  %v590_v57 = vmul.f32 %v2028_v52, %v2523_v20  ;;  %2031 = vpow2.f32 %v354_v50  ;;  %v2617_v59 = vpack.c.bf16 %v187_v51, %v187_v51  ;;  %v758_v50 = vunpack.c.l.bf16 %v2594_v55 }
  0xf2   :  { %v592_v60 = vmul.f32 %v2030_v56, %v2525_v21  ;;  %2033 = vrcp.f32 %v594_v54  ;;  %v437_v61 = vunpack.c.l.bf16 %v405_v53  ;;  %v759_v52 = vunpack.c.l.bf16 %v2602_v10 }
  0xf3   :  { %2035 = vrcp.f32 %v595_v32  ;;  %v279_v63 = vxor.u32 2147516416, %v2617_v59 }
  0xf4   :  { %v593_v0 = vpack.c.bf16 %v590_v57, %v592_v60  ;;  %v469_v1 = vadd.f32 1.0, %v437_v61 }
  0xf5   :  { %v311_v3 = vunpack.c.l.bf16 %v279_v63 }
  0xf6   :  { %v789_v5 = vunpack.c.l.bf16 %v593_v0  ;;  %v501_v8 = vpack.c.bf16 %v469_v1, %v469_v1  ;;  %v189_v6 = vpop.f32.mrf.mxu0 }
  0xf7   :  { %v2032_v7 = vpop.eup %2031  ;;  %v356_v11 = vmul.f32 1.442695, %v311_v3  ;;  %v190_v12 = vadd.f32 %v2465_v28, %v189_v6 }
  0xf8   :  { %v2034_v13 = vpop.eup %2033  ;;  %v821_v14 = vmul.f32 %v789_v5, %v757_v4  ;;  %v601_v15 = vunpack.c.h.bf16 %v501_v8  ;;  %v602_v16 = vunpack.c.l.bf16 %v501_v8  ;;  %v406_v17 = vpack.c.bf16 %v2032_v7, %v2032_v7 }
  0xf9   :  { %v2036_v43 = vpop.eup %2035  ;;  %2037 = vpow2.f32 %v356_v11  ;;  %v2624_v18 = vpack.c.bf16 %v190_v12, %v190_v12  ;;  %v597_v19 = vmul.f32 %v2034_v13, %v2523_v20 }
  0xfa   :  { %2039 = vrcp.f32 %v601_v15  ;;  %v438_v58 = vunpack.c.l.bf16 %v406_v17  ;;  %v848_v26 = vpack.c.bf16 %v821_v14, %v820_v9  ;;  %v599_v22 = vmul.f32 %v2036_v43, %v2525_v21  ;;  %v219_v17 = vpop.f32.mrf.mxu3 }
  0xfb   :  { %2041 = vrcp.f32 %v602_v16  ;;  %v280_v23 = vxor.u32 2147516416, %v2624_v18 }
  0xfc   :  { %v470_v24 = vadd.f32 1.0, %v438_v58  ;;  %1905 = vmatmul.msk.bf16.gmra.mxu1 %vm896_vm1, %v848_v26  ;;  %v600_v31 = vpack.c.bf16 %v597_v19, %v599_v22 }
  0xfd   :  { %v312_v25 = vunpack.c.l.bf16 %v280_v23 }
  0xfe   :  { %v502_v27 = vpack.c.bf16 %v470_v24, %v470_v24  ;;  %v191_v29 = vpop.f32.mrf.mxu0  ;;  %v790_v46 = vunpack.c.l.bf16 %v600_v31 }
  0xff   :  { %v2038_v30 = vpop.eup %2037  ;;  %v358_v33 = vmul.f32 1.442695, %v312_v25  ;;  %v192_v35 = vadd.f32 %v2465_v28, %v191_v29 }
 0x100   :  { %v2040_v36 = vpop.eup %2039  ;;  %v608_v37 = vunpack.c.h.bf16 %v502_v27  ;;  %v609_v34 = vunpack.c.l.bf16 %v502_v27  ;;  %v407_v41 = vpack.c.bf16 %v2038_v30, %v2038_v30  ;;  %v822_v57 = vmul.f32 %v790_v46, %v758_v50 }
 0x101   :  { %v2042_v39 = vpop.eup %2041  ;;  %v604_v40 = vmul.f32 %v2040_v36, %v2523_v20  ;;  %2043 = vpow2.f32 %v358_v33  ;;  %v2632_v42 = vpack.c.bf16 %v192_v35, %v192_v35  ;;  %v760_v35 = vunpack.c.l.bf16 %v2609_v38 }
 0x102   :  { %v606_v44 = vmul.f32 %v2042_v39, %v2525_v21  ;;  %2045 = vrcp.f32 %v608_v37  ;;  %v439_v45 = vunpack.c.l.bf16 %v407_v41  ;;  %v761_v37 = vunpack.c.l.bf16 %v2617_v59 }
 0x103   :  { %2047 = vrcp.f32 %v609_v34  ;;  %v281_v47 = vxor.u32 2147516416, %v2632_v42 }
 0x104   :  { %v607_v48 = vpack.c.bf16 %v604_v40, %v606_v44  ;;  %v471_v49 = vadd.f32 1.0, %v439_v45  ;;  %v220_v40 = vadd.f32 %v2465_v28, %v219_v17 }
 0x105   :  { %v313_v51 = vunpack.c.l.bf16 %v281_v47 }
 0x106   :  { %v791_v54 = vunpack.c.l.bf16 %v607_v48  ;;  %v503_v32 = vpack.c.bf16 %v471_v49, %v471_v49  ;;  %v194_v53 = vpop.f32.mrf.mxu0  ;;  %v2657_v59 = vpack.c.bf16 %v220_v40, %v220_v40 }
 0x107   :  { %v2044_v56 = vpop.eup %2043  ;;  %v360_v60 = vmul.f32 1.442695, %v313_v51  ;;  %v195_v61 = vadd.f32 %v2465_v28, %v194_v53 }
 0x108   :  { %v2046_v62 = vpop.eup %2045  ;;  %v823_v63 = vmul.f32 %v791_v54, %v759_v52  ;;  %v615_v0 = vunpack.c.h.bf16 %v503_v32  ;;  %v616_v1 = vunpack.c.l.bf16 %v503_v32  ;;  %v408_v2 = vpack.c.bf16 %v2044_v56, %v2044_v56  ;;  %v221_v32 = vpop.f32.mrf.mxu3 }
 0x109   :  { %v2048_v3 = vpop.eup %2047  ;;  %2049 = vpow2.f32 %v360_v60  ;;  %v2639_v4 = vpack.c.bf16 %v195_v61, %v195_v61  ;;  %v611_v5 = vmul.f32 %v2046_v62, %v2523_v20  ;;  %v292_v62 = vxor.u32 2147516416, %v2657_v59 }
 0x10a   :  { %2051 = vrcp.f32 %v615_v0  ;;  %v440_v55 = vunpack.c.l.bf16 %v408_v2  ;;  %v849_v10 = vpack.c.bf16 %v823_v63, %v822_v57  ;;  %v613_v8 = vmul.f32 %v2048_v3, %v2525_v21 }
 0x10b   :  { %2053 = vrcp.f32 %v616_v1  ;;  %v282_v6 = vxor.u32 2147516416, %v2639_v4  ;;  %v222_v0 = vadd.f32 %v2465_v28, %v221_v32 }
 0x10c   :  { %v472_v7 = vadd.f32 1.0, %v440_v55  ;;  %1906 = vmatmul.msk.bf16.gmra.mxu1 %vm896_vm1, %v849_v10  ;;  %v614_v14 = vpack.c.bf16 %v611_v5, %v613_v8  ;;  %v324_v55 = vunpack.c.l.bf16 %v292_v62 }
 0x10d   :  { %v314_v9 = vunpack.c.l.bf16 %v282_v6  ;;  %v2665_v10 = vpack.c.bf16 %v222_v0, %v222_v0 }
 0x10e   :  { %v504_v11 = vpack.c.bf16 %v472_v7, %v472_v7  ;;  %v196_v12 = vpop.f32.mrf.mxu0  ;;  %v792_v29 = vunpack.c.l.bf16 %v614_v14 }
 0x10f   :  { %v2050_v13 = vpop.eup %2049  ;;  %v362_v15 = vmul.f32 1.442695, %v314_v9  ;;  %v197_v16 = vadd.f32 %v2465_v28, %v196_v12  ;;  %v293_v17 = vxor.u32 2147516416, %v2665_v10 }
 0x110   :  { %v2052_v43 = vpop.eup %2051  ;;  %v622_v58 = vunpack.c.h.bf16 %v504_v11  ;;  %v623_v26 = vunpack.c.l.bf16 %v504_v11  ;;  %v409_v19 = vpack.c.bf16 %v2050_v13, %v2050_v13  ;;  %v824_v45 = vmul.f32 %v792_v29, %v760_v35 }
 0x111   :  { %v2054_v22 = vpop.eup %2053  ;;  %v618_v23 = vmul.f32 %v2052_v43, %v2523_v20  ;;  %2055 = vpow2.f32 %v362_v15  ;;  %v2647_v24 = vpack.c.bf16 %v197_v16, %v197_v16  ;;  %v762_v29 = vunpack.c.l.bf16 %v2624_v18 }
 0x112   :  { %v620_v25 = vmul.f32 %v2054_v22, %v2525_v21  ;;  %2057 = vrcp.f32 %v622_v58  ;;  %v441_v27 = vunpack.c.l.bf16 %v409_v19 }
 0x113   :  { %2059 = vrcp.f32 %v623_v26  ;;  %v283_v30 = vxor.u32 2147516416, %v2647_v24  ;;  %v382_v26 = vmul.f32 1.442695, %v324_v55 }
 0x114   :  { %v621_v31 = vpack.c.bf16 %v618_v23, %v620_v25  ;;  %v473_v33 = vadd.f32 1.0, %v441_v27  ;;  %v325_v23 = vunpack.c.l.bf16 %v293_v17 }
 0x115   :  { %v315_v36 = vunpack.c.l.bf16 %v283_v30 }
 0x116   :  { %v793_v34 = vunpack.c.l.bf16 %v621_v31  ;;  %v505_v41 = vpack.c.bf16 %v473_v33, %v473_v33  ;;  %v199_v39 = vpop.f32.mrf.mxu0  ;;  %v763_v31 = vunpack.c.l.bf16 %v2632_v42  ;;  %v384_v40 = vmul.f32 1.442695, %v325_v23 }
 0x117   :  { %v2056_v44 = vpop.eup %2055  ;;  %v364_v46 = vmul.f32 1.442695, %v315_v36  ;;  %v200_v47 = vadd.f32 %v2465_v28, %v199_v39 }
 0x118   :  { %v2058_v48 = vpop.eup %2057  ;;  %v825_v49 = vmul.f32 %v793_v34, %v761_v37  ;;  %v629_v50 = vunpack.c.h.bf16 %v505_v41  ;;  %v630_v51 = vunpack.c.l.bf16 %v505_v41  ;;  %v410_v52 = vpack.c.bf16 %v2056_v44, %v2056_v44 }
 0x119   :  { %v2060_v54 = vpop.eup %2059  ;;  %2061 = vpow2.f32 %v364_v46  ;;  %v2655_v38 = vpack.c.bf16 %v200_v47, %v200_v47  ;;  %v625_v53 = vmul.f32 %v2058_v48, %v2523_v20 }
 0x11a   :  { %2063 = vrcp.f32 %v629_v50  ;;  %v442_v56 = vunpack.c.l.bf16 %v410_v52  ;;  %v850_v57 = vpack.c.bf16 %v825_v49, %v824_v45  ;;  %v627_v60 = vmul.f32 %v2060_v54, %v2525_v21 }
 0x11b   :  { %2065 = vrcp.f32 %v630_v51  ;;  %v284_v61 = vxor.u32 2147516416, %v2655_v38 }
 0x11c   :  { %v474_v63 = vadd.f32 1.0, %v442_v56  ;;  %1907 = vmatmul.msk.bf16.gmra.mxu1 %vm896_vm1, %v850_v57  ;;  %v628_v8 = vpack.c.bf16 %v625_v53, %v627_v60 }
 0x11d   :  { %v316_v1 = vunpack.c.l.bf16 %v284_v61 }
 0x11e   :  { %v506_v2 = vpack.c.bf16 %v474_v63, %v474_v63  ;;  %v201_v3 = vpop.f32.mrf.mxu0  ;;  %v794_v19 = vunpack.c.l.bf16 %v628_v8  ;;  %v2686_v63 = vld [vmem:[%s3277_s2] ss:$0 sm:$0xff] }
 0x11f   :  { %v2062_v5 = vpop.eup %2061  ;;  %v366_v6 = vmul.f32 1.442695, %v316_v1  ;;  %v202_v7 = vadd.f32 %v2465_v28, %v201_v3  ;;  %v224_v1 = vpop.f32.mrf.mxu3 }
 0x120   :  { %v2064_v9 = vpop.eup %2063  ;;  %v636_v11 = vunpack.c.h.bf16 %v506_v2  ;;  %v637_v12 = vunpack.c.l.bf16 %v506_v2  ;;  %v411_v13 = vpack.c.bf16 %v2062_v5, %v2062_v5  ;;  %v826_v34 = vmul.f32 %v794_v19, %v762_v29 }
 0x121   :  { %v2066_v14 = vpop.eup %2065  ;;  %v632_v15 = vmul.f32 %v2064_v9, %v2523_v20  ;;  %2067 = vpow2.f32 %v366_v6  ;;  %v2669_v16 = vpack.c.bf16 %v202_v7, %v202_v7 }
 0x122   :  { %v634_v43 = vmul.f32 %v2066_v14, %v2525_v21  ;;  %2069 = vrcp.f32 %v636_v11  ;;  %v443_v58 = vunpack.c.l.bf16 %v411_v13 }
 0x123   :  { %2071 = vrcp.f32 %v637_v12  ;;  %v285_v22 = vxor.u32 2147516416, %v2669_v16 }
 0x124   :  { %v635_v25 = vpack.c.bf16 %v632_v15, %v634_v43  ;;  %v475_v27 = vadd.f32 1.0, %v443_v58  ;;  %2073 = vpow2.f32 %v382_v26  ;;  %v764_v58 = vunpack.c.l.bf16 %v2639_v4 }
 0x125   :  { %v317_v30 = vunpack.c.l.bf16 %v285_v22  ;;  %v765_v22 = vunpack.c.l.bf16 %v2647_v24  ;;  %v225_v4 = vadd.f32 %v2686_v63, %v224_v1 }
 0x126   :  { %v795_v33 = vunpack.c.l.bf16 %v635_v25  ;;  %v507_v35 = vpack.c.bf16 %v475_v27, %v475_v27  ;;  %v204_v36 = vpop.f32.mrf.mxu0 }
 0x127   :  { %v2068_v37 = vpop.eup %2067  ;;  %v368_v41 = vmul.f32 1.442695, %v317_v30  ;;  %v205_v39 = vadd.f32 %v2465_v28, %v204_v36  ;;  %v2700_v36 = vld [vmem:[%s3279_s4] ss:$0 sm:$0xff] }
 0x128   :  { %v2070_v44 = vpop.eup %2069  ;;  %v827_v45 = vmul.f32 %v795_v33, %v763_v31  ;;  %v643_v46 = vunpack.c.h.bf16 %v507_v35  ;;  %v644_v47 = vunpack.c.l.bf16 %v507_v35  ;;  %v412_v48 = vpack.c.bf16 %v2068_v37, %v2068_v37 }
 0x129   :  { %v2072_v49 = vpop.eup %2071  ;;  %2075 = vpow2.f32 %v368_v41  ;;  %v2677_v18 = vpack.c.bf16 %v205_v39, %v205_v39  ;;  %v639_v51 = vmul.f32 %v2070_v44, %v2523_v20 }
 0x12a   :  { %2077 = vrcp.f32 %v643_v46  ;;  %v444_v42 = vunpack.c.l.bf16 %v412_v48  ;;  %v851_v50 = vpack.c.bf16 %v827_v45, %v826_v34  ;;  %v641_v52 = vmul.f32 %v2072_v49, %v2525_v21  ;;  %v2074_v54 = vpop.eup %2073  ;;  %v226_v45 = vpop.f32.mrf.mxu3 }
 0x12b   :  { %2079 = vrcp.f32 %v644_v47  ;;  %v286_v28 = vxor.u32 2147516416, %v2677_v18  ;;  %v420_v62 = vpack.c.bf16 %v2074_v54, %v2074_v54  ;;  %v2706_v49 = vpack.c.bf16 %v225_v4, %v225_v4 }
 0x12c   :  { %v476_v32 = vadd.f32 1.0, %v444_v42  ;;  %1908 = vmatmul.msk.bf16.gmra.mxu1 %vm896_vm1, %v851_v50  ;;  %2081 = vpow2.f32 %v384_v40  ;;  %v642_v60 = vpack.c.bf16 %v639_v51, %v641_v52  ;;  %v227_v42 = vadd.f32 %v2686_v63, %v226_v45 }
 0x12d   :  { %v318_v53 = vunpack.c.l.bf16 %v286_v28  ;;  %v452_v13 = vunpack.c.l.bf16 %v420_v62 }
 0x12e   :  { %v206_v56 = vpop.f32.mrf.mxu0  ;;  %v508_v3 = vpack.c.bf16 %v476_v32, %v476_v32  ;;  %v796_v12 = vunpack.c.l.bf16 %v642_v60  ;;  %v294_v60 = vxor.u32 2147516416, %v2706_v49  ;;  %v2716_v1 = vpack.c.bf16 %v227_v42, %v227_v42 }
 0x12f   :  { %v2076_v57 = vpop.eup %2075  ;;  %v370_v61 = vmul.f32 1.442695, %v318_v53  ;;  %v207_v0 = vadd.f32 %v2686_v63, %v206_v56  ;;  %v484_v33 = vadd.f32 1.0, %v452_v13 }
 0x130   :  { %v2078_v2 = vpop.eup %2077  ;;  %v413_v55 = vpack.c.bf16 %v2076_v57, %v2076_v57  ;;  %v650_v15 = vunpack.c.h.bf16 %v508_v3  ;;  %v651_v26 = vunpack.c.l.bf16 %v508_v3  ;;  %v828_v31 = vmul.f32 %v796_v12, %v764_v58 }
 0x131   :  { %v2080_v5 = vpop.eup %2079  ;;  %v646_v8 = vmul.f32 %v2078_v2, %v2523_v20  ;;  %2083 = vpow2.f32 %v370_v61  ;;  %v2691_v11 = vpack.c.bf16 %v207_v0, %v207_v0  ;;  %v516_v51 = vpack.c.bf16 %v484_v33, %v484_v33 }
 0x132   :  { %v2082_v6 = vpop.eup %2081  ;;  %v648_v7 = vmul.f32 %v2080_v5, %v2525_v21  ;;  %v445_v9 = vunpack.c.l.bf16 %v413_v55  ;;  %2085 = vrcp.f32 %v650_v15 }
 0x133   :  { %v287_v43 = vxor.u32 2147516416, %v2691_v11  ;;  %v421_v19 = vpack.c.bf16 %v2082_v6, %v2082_v6  ;;  %2087 = vrcp.f32 %v651_v26  ;;  %v706_v55 = vunpack.c.h.bf16 %v516_v51 }
 0x134   :  { %v649_v14 = vpack.c.bf16 %v646_v8, %v648_v7  ;;  %v477_v17 = vadd.f32 1.0, %v445_v9  ;;  %v707_v15 = vunpack.c.l.bf16 %v516_v51 }
 0x135   :  { %v319_v27 = vunpack.c.l.bf16 %v287_v43  ;;  %v453_v40 = vunpack.c.l.bf16 %v421_v19  ;;  %v326_v43 = vunpack.c.l.bf16 %v294_v60 }
 0x136   :  { %v797_v23 = vunpack.c.l.bf16 %v649_v14  ;;  %v509_v25 = vpack.c.bf16 %v477_v17, %v477_v17  ;;  %v209_v29 = vpop.f32.mrf.mxu0 }
 0x137   :  { %v2084_v30 = vpop.eup %2083  ;;  %v210_v35 = vadd.f32 %v2686_v63, %v209_v29  ;;  %v372_v39 = vmul.f32 1.442695, %v319_v27  ;;  %v485_v52 = vadd.f32 1.0, %v453_v40  ;;  %v386_v4 = vmul.f32 1.442695, %v326_v43 }
 0x138   :  { %v829_v37 = vmul.f32 %v797_v23, %v765_v22  ;;  %v657_v34 = vunpack.c.h.bf16 %v509_v25  ;;  %v658_v24 = vunpack.c.l.bf16 %v509_v25  ;;  %v414_v41 = vpack.c.bf16 %v2084_v30, %v2084_v30  ;;  %v2086_v54 = vpop.eup %2085 }
 0x139   :  { %v954_v44 = vpop.f32.mrf.mxu1  ;;  %v2703_v46 = vpack.c.bf16 %v210_v35, %v210_v35  ;;  %v2088_v56 = vpop.eup %2087  ;;  %v517_v5 = vpack.c.bf16 %v485_v52, %v485_v52  ;;  %v653_v26 = vmul.f32 %v2086_v54, %v2523_v20  ;;  %v295_v54 = vxor.u32 2147516416, %v2716_v1 }
 0x13a   :  { %2089 = vrcp.f32 %v657_v34  ;;  %v955_v47 = vadd.f32 %v2700_v36, %v954_v44  ;;  %v852_v48 = vpack.c.bf16 %v829_v37, %v828_v31  ;;  %v446_v50 = vunpack.c.l.bf16 %v414_v41 }
 0x13b   :  { %2091 = vrcp.f32 %v658_v24  ;;  %v288_v28 = vxor.u32 2147516416, %v2703_v46  ;;  %v655_v19 = vmul.f32 %v2088_v56, %v2525_v21  ;;  %v713_v25 = vunpack.c.h.bf16 %v517_v5 }
 0x13c   :  { %2093 = vpow2.f32 %v372_v39  ;;  %1909 = vmatmul.msk.bf16.gmra.mxu1 %vm896_vm1, %v852_v48  ;;  %v2711_v32 = vpack.c.bf16 %v955_v47, %v955_v47  ;;  %v478_v3 = vadd.f32 1.0, %v446_v50  ;;  %v714_v31 = vunpack.c.l.bf16 %v517_v5 }
 0x13d   :  { %v320_v57 = vunpack.c.l.bf16 %v288_v28  ;;  %v656_v24 = vpack.c.bf16 %v653_v26, %v655_v19  ;;  %v767_v41 = vunpack.c.l.bf16 %v2669_v16  ;;  %v327_v43 = vunpack.c.l.bf16 %v295_v54 }
 0x13e   :  { %v211_v53 = vpop.f32.mrf.mxu0  ;;  %v1066_v0 = vxor.u32 2147516416, %v2711_v32  ;;  %v510_v30 = vpack.c.bf16 %v478_v3, %v478_v3  ;;  %v766_v3 = vunpack.c.l.bf16 %v2655_v38 }
 0x13f   :  { %v212_v61 = vadd.f32 %v2686_v63, %v211_v53  ;;  %v374_v8 = vmul.f32 1.442695, %v320_v57  ;;  %v798_v53 = vunpack.c.l.bf16 %v656_v24 }
 0x140   :  { %v2090_v62 = vpop.eup %2089  ;;  %v1098_v13 = vunpack.c.l.bf16 %v1066_v0  ;;  %v664_v42 = vunpack.c.h.bf16 %v510_v30  ;;  %v665_v52 = vunpack.c.l.bf16 %v510_v30 }
 0x141   :  { %v2092_v2 = vpop.eup %2091  ;;  %v956_v6 = vpop.f32.mrf.mxu1  ;;  %v660_v9 = vmul.f32 %v2090_v62, %v2523_v20  ;;  %v2720_v14 = vpack.c.bf16 %v212_v61, %v212_v61  ;;  %2095 = vpow2.f32 %v374_v8 }
 0x142   :  { %v2094_v7 = vpop.eup %2093  ;;  %v662_v12 = vmul.f32 %v2092_v2, %v2525_v21  ;;  %v957_v58 = vadd.f32 %v2700_v36, %v956_v6  ;;  %v1130_v22 = vmul.f32 1.442695, %v1098_v13  ;;  %2097 = vrcp.f32 %v706_v55 }
 0x143   :  { %v415_v17 = vpack.c.bf16 %v2094_v7, %v2094_v7  ;;  %v289_v27 = vxor.u32 2147516416, %v2720_v14 }
 0x144   :  { %v663_v29 = vpack.c.bf16 %v660_v9, %v662_v12  ;;  %2099 = vpow2.f32 %v1130_v22  ;;  %v2726_v34 = vpack.c.bf16 %v957_v58, %v957_v58  ;;  %v830_v9 = vmul.f32 %v798_v53, %v766_v3 }
 0x145   :  { %v447_v23 = vunpack.c.l.bf16 %v415_v17  ;;  %v321_v37 = vunpack.c.l.bf16 %v289_v27  ;;  %2101 = vrcp.f32 %v707_v15 }
 0x146   :  { %v214_v33 = vpop.f32.mrf.mxu0  ;;  %2103 = vrcp.f32 %v713_v25  ;;  %v799_v48 = vunpack.c.l.bf16 %v663_v29  ;;  %v1067_v50 = vxor.u32 2147516416, %v2726_v34 }
 0x147   :  { %v479_v35 = vadd.f32 1.0, %v447_v23  ;;  %v376_v40 = vmul.f32 1.442695, %v321_v37  ;;  %v215_v44 = vadd.f32 %v2686_v63, %v214_v33  ;;  %v2096_v47 = vpop.eup %2095  ;;  %2105 = vrcp.f32 %v714_v31 }
 0x148   :  { %v2098_v51 = vpop.eup %2097  ;;  %v416_v28 = vpack.c.bf16 %v2096_v47, %v2096_v47  ;;  %2107 = vpow2.f32 %v386_v4  ;;  %v1099_v57 = vunpack.c.l.bf16 %v1067_v50  ;;  %v831_v55 = vmul.f32 %v799_v48, %v767_v41 }
 0x149   :  { %v511_v39 = vpack.c.bf16 %v479_v35, %v479_v35  ;;  %v959_v45 = vpop.f32.mrf.mxu1  ;;  %2109 = vpow2.f32 %v376_v40  ;;  %v2732_v0 = vpack.c.bf16 %v215_v44, %v215_v44  ;;  %v768_v33 = vunpack.c.l.bf16 %v2677_v18 }
 0x14a   :  { %v2100_v16 = vpop.eup %2099  ;;  %v448_v61 = vunpack.c.l.bf16 %v416_v28  ;;  %2111 = vrcp.f32 %v664_v42  ;;  %v1132_v6 = vmul.f32 1.442695, %v1099_v57  ;;  %v960_v19 = vadd.f32 %v2700_v36, %v959_v45 }
 0x14b   :  { %v671_v56 = vunpack.c.h.bf16 %v511_v39  ;;  %v672_v60 = vunpack.c.l.bf16 %v511_v39  ;;  %v1194_v62 = vpack.c.bf16 %v2100_v16, %v2100_v16  ;;  %v2102_v2 = vpop.eup %2101  ;;  %2113 = vrcp.f32 %v665_v52  ;;  %v1953_v52 = vld [vmem:[%s3280_s5 + $0x10] sm:$0xff] }
 0x14c   :  { %v2104_v5 = vpop.eup %2103  ;;  %v480_v12 = vadd.f32 1.0, %v448_v61  ;;  %v290_v13 = vxor.u32 2147516416, %v2732_v0  ;;  %v853_v22 = vpack.c.bf16 %v831_v55, %v830_v9  ;;  %v2741_v30 = vpack.c.bf16 %v960_v19, %v960_v19  ;;  %1740 = vmatpush.bf16.msra.mxu2 %v1953_v52  ;;  %1960 = vmatpush.bf16.msra.mxu3 %v1953_v52 }
 0x14d   :  { %v1226_v8 = vunpack.c.l.bf16 %v1194_v62  ;;  %v2106_v7 = vpop.eup %2105  ;;  %2115 = vrcp.f32 %v671_v56  ;;  %v774_v35 = vunpack.c.l.bf16 %v2657_v59  ;;  %v769_v4 = vunpack.c.l.bf16 %v2691_v11 }
 0x14e   :  { %v2108_v15 = vpop.eup %2107  ;;  %2117 = vrcp.f32 %v672_v60  ;;  %v322_v38 = vunpack.c.l.bf16 %v290_v13  ;;  %v2739_v27 = vpack.c.bf16 %v480_v12, %v480_v12  ;;  %1910 = vmatmul.msk.bf16.gmra.mxu1 %vm896_vm1, %v853_v22  ;;  %v388_v40 = vmul.f32 1.442695, %v327_v43 }
 0x14f   :  { %v1258_v17 = vadd.f32 1.0, %v1226_v8  ;;  %v2110_v26 = vpop.eup %2109  ;;  %2119 = vpow2.f32 %v1132_v6  ;;  %v422_v29 = vpack.c.bf16 %v2108_v15, %v2108_v15  ;;  %v1068_v44 = vxor.u32 2147516416, %v2741_v30  ;;  %v229_v15 = vpop.f32.mrf.mxu3 }
 0x150   :  { %v417_v23 = vpack.c.bf16 %v2110_v26, %v2110_v26  ;;  %v2112_v25 = vpop.eup %2111  ;;  %v378_v37 = vmul.f32 1.442695, %v322_v38  ;;  %v709_v47 = vmul.f32 %v2098_v51, %v2523_v20  ;;  %v711_v48 = vmul.f32 %v2102_v2, %v2525_v21 }
 0x151   :  { %v2736_v58 = vpop.f32.mrf.mxu1  ;;  %v2114_v31 = vpop.eup %2113  ;;  %v1290_v41 = vpack.c.bf16 %v1258_v17, %v1258_v17  ;;  %v716_v42 = vmul.f32 %v2104_v5, %v2523_v20  ;;  %v718_v50 = vmul.f32 %v2106_v7, %v2525_v21  ;;  %v667_v54 = vmul.f32 %v2112_v25, %v2523_v20  ;;  %v1952_v7 = vld [vmem:[%s3280_s5 + $0x8] sm:$0xff] }
 0x152   :  { %v449_v39 = vunpack.c.l.bf16 %v417_v23  ;;  %v678_v16 = vunpack.c.h.bf16 %v2739_v27  ;;  %v454_v53 = vunpack.c.l.bf16 %v422_v29  ;;  %v669_v57 = vmul.f32 %v2114_v31, %v2525_v21  ;;  %v216_v17 = vpop.f32.mrf.mxu0  ;;  %1741 = vmatpush.bf16.msra.mxu2 %v1952_v7  ;;  %1961 = vmatpush.bf16.msra.mxu3 %v1952_v7 }
 0x153   :  { %v2116_v24 = vpop.eup %2115  ;;  %2121 = vpow2.f32 %v378_v37  ;;  %v1100_v60 = vunpack.c.l.bf16 %v1068_v44  ;;  %v1322_v2 = vunpack.c.h.bf16 %v1290_v41  ;;  %v1323_v5 = vunpack.c.l.bf16 %v1290_v41 }
 0x154   :  { %v2118_v45 = vpop.eup %2117  ;;  %v481_v56 = vadd.f32 1.0, %v449_v39  ;;  %v674_v62 = vmul.f32 %v2116_v24, %v2523_v20  ;;  %2123 = vpow2.f32 %v388_v40  ;;  %v712_v9 = vpack.c.bf16 %v709_v47, %v711_v48  ;;  %v1951_v24 = vld [vmem:[%s3280_s5] sm:$0xff] }
 0x155   :  { %v2120_v28 = vpop.eup %2119  ;;  %v676_v55 = vmul.f32 %v2118_v45, %v2525_v21  ;;  %v1134_v6 = vmul.f32 1.442695, %v1100_v60  ;;  %v719_v12 = vpack.c.bf16 %v716_v42, %v718_v50  ;;  %2125 = vrcp.f32 %v678_v16 }
 0x156   :  { %v1195_v51 = vpack.c.bf16 %v2120_v28, %v2120_v28  ;;  %v513_v3 = vpack.c.bf16 %v481_v56, %v481_v56  ;;  %v230_v38 = vadd.f32 %v2686_v63, %v229_v15  ;;  %v670_v19 = vpack.c.bf16 %v667_v54, %v669_v57  ;;  %1742 = vmatpush.bf16.msra.mxu2 %v1951_v24 }
 0x157   :  { %2127 = vpow2.f32 %v1134_v6  ;;  %v679_v22 = vunpack.c.l.bf16 %v2739_v27  ;;  %v486_v23 = vadd.f32 1.0, %v454_v53  ;;  %v677_v29 = vpack.c.bf16 %v674_v62, %v676_v55  ;;  %1962 = vmatpush.bf16.msra.mxu3 %v1951_v24 }
 0x158   :  { %v1227_v8 = vunpack.c.l.bf16 %v1195_v51  ;;  %v685_v13 = vunpack.c.h.bf16 %v513_v3  ;;  %v686_v43 = vunpack.c.l.bf16 %v513_v3  ;;  %2129 = vrcp.f32 %v1322_v2 }
 0x159   :  { %v2758_v61 = vpop.f32.mrf.mxu1  ;;  %v2122_v25 = vpop.eup %2121  ;;  %2131 = vrcp.f32 %v1323_v5  ;;  %v217_v37 = vadd.f32 %v2686_v63, %v216_v17  ;;  %v806_v39 = vunpack.c.l.bf16 %v712_v9  ;;  %v775_v40 = vunpack.c.l.bf16 %v2665_v10 }
 0x15a   :  { %v1259_v26 = vadd.f32 1.0, %v1227_v8  ;;  %v2771_v41 = vpop.eup %2123  ;;  %2133 = vrcp.f32 %v685_v13  ;;  %v418_v44 = vpack.c.bf16 %v2122_v25, %v2122_v25  ;;  %v2774_v47 = vpack.c.bf16 %v230_v38, %v230_v38 }
 0x15b   :  { %2135 = vrcp.f32 %v686_v43  ;;  %v2126_v42 = vpop.eup %2125  ;;  %v807_v50 = vunpack.c.l.bf16 %v719_v12  ;;  %v2778_v52 = vpack.c.bf16 %v486_v23, %v486_v23  ;;  %v800_v16 = vunpack.c.l.bf16 %v670_v19 }
 0x15c   :  { %v1291_v31 = vpack.c.bf16 %v1259_v26, %v1259_v26  ;;  %2137 = vrcp.f32 %v679_v22  ;;  %v450_v28 = vunpack.c.l.bf16 %v418_v44  ;;  %v801_v10 = vunpack.c.l.bf16 %v677_v29 }
 0x15d   :  { %v2128_v54 = vpop.eup %2127  ;;  %v2780_v53 = vpack.c.bf16 %v217_v37, %v217_v37  ;;  %v962_v60 = vadd.f32 %v2700_v36, %v2736_v58  ;;  %v770_v2 = vunpack.c.l.bf16 %v2703_v46  ;;  %v1546_v3 = vunpack.c.l.bf16 %v2711_v32 }
 0x15e   :  { %v1329_v27 = vunpack.c.h.bf16 %v1291_v31  ;;  %v1330_v45 = vunpack.c.l.bf16 %v1291_v31  ;;  %v2130_v56 = vpop.eup %2129  ;;  %v482_v57 = vadd.f32 1.0, %v450_v28  ;;  %v1196_v51 = vpack.c.bf16 %v2128_v54, %v2128_v54 }
 0x15f   :  { %v2132_v62 = vpop.eup %2131  ;;  %v296_v55 = vxor.u32 2147516416, %v2774_v47  ;;  %v291_v5 = vxor.u32 2147516416, %v2780_v53  ;;  %v2790_v6 = vmul.f32 %v806_v39, %v774_v35  ;;  %v771_v7 = vunpack.c.l.bf16 %v2720_v14 }
 0x160   :  { %2139 = vrcp.f32 %v1329_v27  ;;  %v2134_v8 = vpop.eup %2133  ;;  %v514_v9 = vpack.c.bf16 %v482_v57, %v482_v57  ;;  %v1228_v12 = vunpack.c.l.bf16 %v1196_v51  ;;  %v2793_v58 = vmul.f32 %v807_v50, %v775_v40 }
 0x161   :  { %v2776_v48 = vpop.f32.mrf.mxu1  ;;  %2141 = vrcp.f32 %v1330_v45  ;;  %v2136_v13 = vpop.eup %2135  ;;  %v1547_v15 = vunpack.c.l.bf16 %v2726_v34  ;;  %v323_v17 = vunpack.c.l.bf16 %v291_v5  ;;  %v2796_v43 = vpack.c.bf16 %v962_v60, %v962_v60 }
 0x162   :  { %v2138_v26 = vpop.eup %2137  ;;  %v832_v38 = vmul.f32 %v800_v16, %v768_v33  ;;  %v833_v59 = vmul.f32 %v801_v10, %v769_v4  ;;  %v1325_v35 = vmul.f32 %v2130_v56, %v2523_v20  ;;  %v720_v19 = vunpack.c.h.bf16 %v2778_v52  ;;  %v231_v56 = vpop.f32.mrf.mxu3 }
 0x163   :  { %v1260_v23 = vadd.f32 1.0, %v1228_v12  ;;  %v328_v25 = vunpack.c.l.bf16 %v296_v55  ;;  %v380_v29 = vmul.f32 1.442695, %v323_v17  ;;  %v1069_v31 = vxor.u32 2147516416, %v2796_v43 }
 0x164   :  { %v1327_v39 = vmul.f32 %v2132_v62, %v2525_v21  ;;  %v688_v18 = vmul.f32 %v2134_v8, %v2523_v20  ;;  %v690_v33 = vmul.f32 %v2136_v13, %v2525_v21  ;;  %v692_v11 = vunpack.c.h.bf16 %v514_v9 }
 0x165   :  { %v693_v44 = vunpack.c.l.bf16 %v514_v9  ;;  %v1101_v27 = vunpack.c.l.bf16 %v1069_v31  ;;  %v681_v45 = vmul.f32 %v2126_v42, %v2523_v20  ;;  %v683_v50 = vmul.f32 %v2138_v26, %v2525_v21 }
 0x166   :  { %v2140_v22 = vpop.eup %2139  ;;  %2143 = vrcp.f32 %v720_v19  ;;  %v423_v28 = vpack.c.bf16 %v2771_v41, %v2771_v41  ;;  %v1292_v54 = vpack.c.bf16 %v1260_v23, %v1260_v23  ;;  %v390_v16 = vmul.f32 1.442695, %v328_v25 }
 0x167   :  { %v2142_v24 = vpop.eup %2141  ;;  %v1332_v4 = vmul.f32 %v2140_v22, %v2523_v20  ;;  %2145 = vpow2.f32 %v380_v29  ;;  %v1136_v10 = vmul.f32 1.442695, %v1101_v27  ;;  %v1328_v57 = vpack.c.bf16 %v1325_v35, %v1327_v39 }
 0x168   :  { %v1334_v40 = vmul.f32 %v2142_v24, %v2525_v21  ;;  %v721_v51 = vunpack.c.l.bf16 %v2778_v52  ;;  %2147 = vrcp.f32 %v692_v11  ;;  %v965_v60 = vadd.f32 %v2700_v36, %v2758_v61 }
 0x169   :  { %v969_v37 = vpop.f32.mrf.mxu1  ;;  %v691_v62 = vpack.c.bf16 %v688_v18, %v690_v33  ;;  %2149 = vrcp.f32 %v693_v44  ;;  %v854_v55 = vpack.c.bf16 %v833_v59, %v832_v38  ;;  %v455_v5 = vunpack.c.l.bf16 %v423_v28 }
 0x16a   :  { %v1335_v42 = vpack.c.bf16 %v1332_v4, %v1334_v40  ;;  %v772_v8 = vunpack.c.l.bf16 %v2732_v0  ;;  %2151 = vpow2.f32 %v1136_v10  ;;  %v232_v41 = vadd.f32 %v2686_v63, %v231_v56 }
 0x16b   :  { %v684_v9 = vpack.c.bf16 %v681_v45, %v683_v50  ;;  %v1336_v12 = vunpack.c.h.bf16 %v1292_v54  ;;  %2153 = vpow2.f32 %v390_v16  ;;  %v2819_v13 = vpack.c.bf16 %v965_v60, %v965_v60  ;;  %1911 = vmatmul.msk.bf16.gmra.mxu1 %vm896_vm1, %v854_v55 }
 0x16c   :  { %v2822_v17 = vpop.eup %2143  ;;  %v1578_v61 = vunpack.c.l.bf16 %v1328_v57  ;;  %2155 = vrcp.f32 %v721_v51  ;;  %v1337_v26 = vunpack.c.l.bf16 %v1292_v54  ;;  %v967_v38 = vadd.f32 %v2700_v36, %v2776_v48 }
 0x16d   :  { %v2146_v59 = vpop.eup %2145  ;;  %v803_v35 = vunpack.c.l.bf16 %v691_v62  ;;  %v1579_v19 = vunpack.c.l.bf16 %v1335_v42  ;;  %v1548_v63 = vunpack.c.l.bf16 %v2741_v30  ;;  %v1070_v22 = vxor.u32 2147516416, %v2819_v13 }
 0x16e   :  { %v2148_v23 = vpop.eup %2147  ;;  %v487_v25 = vadd.f32 1.0, %v455_v5  ;;  %v419_v29 = vpack.c.bf16 %v2146_v59, %v2146_v59  ;;  %v2828_v31 = vpack.c.bf16 %v232_v41, %v232_v41  ;;  %v2830_v24 = vpack.c.bf16 %v967_v38, %v967_v38 }
 0x16f   :  { %v2150_v39 = vpop.eup %2149  ;;  %v802_v18 = vunpack.c.l.bf16 %v684_v9  ;;  %2157 = vrcp.f32 %v1336_v12  ;;  %v1102_v33 = vunpack.c.l.bf16 %v1070_v22  ;;  %v970_v48 = vadd.f32 %v2700_v36, %v969_v37 }
 0x170   :  { %v2152_v11 = vpop.eup %2151  ;;  %v1610_v4 = vmul.f32 %v1578_v61, %v1546_v3  ;;  %2159 = vrcp.f32 %v1337_v26  ;;  %v451_v40 = vunpack.c.l.bf16 %v419_v29  ;;  %v1071_v44 = vxor.u32 2147516416, %v2830_v24 }
 0x171   :  { %v971_v52 = vpop.f32.mrf.mxu1  ;;  %v2154_v27 = vpop.eup %2153  ;;  %v835_v45 = vmul.f32 %v803_v35, %v771_v7  ;;  %v1611_v50 = vmul.f32 %v1579_v19, %v1547_v15  ;;  %v1197_v28 = vpack.c.bf16 %v2152_v11, %v2152_v11  ;;  %v1138_v54 = vmul.f32 1.442695, %v1102_v33 }
 0x172   :  { %v2840_v16 = vpop.eup %2155  ;;  %v695_v37 = vmul.f32 %v2148_v23, %v2523_v20  ;;  %v697_v32 = vmul.f32 %v2150_v39, %v2525_v21  ;;  %v483_v3 = vadd.f32 1.0, %v451_v40  ;;  %v297_v10 = vxor.u32 2147516416, %v2828_v31 }
 0x173   :  { %v1229_v56 = vunpack.c.l.bf16 %v1197_v28  ;;  %2161 = vpow2.f32 %v1138_v54  ;;  %v1103_v57 = vunpack.c.l.bf16 %v1071_v44  ;;  %v2845_v51 = vpack.c.bf16 %v970_v48, %v970_v48 }
 0x174   :  { %v834_v34 = vmul.f32 %v802_v18, %v770_v2  ;;  %v2849_v7 = vpack.c.bf16 %v487_v25, %v487_v25  ;;  %v424_v15 = vpack.c.bf16 %v2154_v27, %v2154_v27  ;;  %v515_v60 = vpack.c.bf16 %v483_v3, %v483_v3 }
 0x175   :  { %v2158_v62 = vpop.eup %2157  ;;  %v1261_v42 = vadd.f32 1.0, %v1229_v56  ;;  %v1140_v55 = vmul.f32 1.442695, %v1103_v57  ;;  %v1072_v5 = vxor.u32 2147516416, %v2845_v51  ;;  %v1642_v41 = vpack.c.bf16 %v1611_v50, %v1610_v4 }
 0x176   :  { %v2160_v9 = vpop.eup %2159  ;;  %v698_v12 = vpack.c.bf16 %v695_v37, %v697_v32  ;;  %v699_v61 = vunpack.c.h.bf16 %v515_v60  ;;  %v700_v26 = vunpack.c.l.bf16 %v515_v60  ;;  %v329_v38 = vunpack.c.l.bf16 %v297_v10 }
 0x177   :  { %v1293_v59 = vpack.c.bf16 %v1261_v42, %v1261_v42  ;;  %2163 = vpow2.f32 %v1140_v55  ;;  %v1104_v35 = vunpack.c.l.bf16 %v1072_v5  ;;  %v855_v46 = vpack.c.bf16 %v835_v45, %v834_v34  ;;  %1929 = vmatmul.msk.bf16.vlgmr.msra.gmra.mxu2 %vm1686_vm2, %v1642_v41 }
 0x178   :  { %v1339_v2 = vmul.f32 %v2158_v62, %v2523_v20  ;;  %2165 = vrcp.f32 %v699_v61  ;;  %v972_v19 = vadd.f32 %v2700_v36, %v971_v52  ;;  %v1341_v23 = vmul.f32 %v2160_v9, %v2525_v21 }
 0x179   :  { %v974_v14 = vpop.f32.mrf.mxu1  ;;  %v2162_v22 = vpop.eup %2161  ;;  %2167 = vrcp.f32 %v700_v26  ;;  %v1343_v25 = vunpack.c.h.bf16 %v1293_v59  ;;  %v1344_v29 = vunpack.c.l.bf16 %v1293_v59  ;;  %v727_v39 = vunpack.c.h.bf16 %v2849_v7 }
 0x17a   :  { %v1198_v18 = vpack.c.bf16 %v2162_v22, %v2162_v22  ;;  %v1142_v33 = vmul.f32 1.442695, %v1104_v35  ;;  %v2857_v48 = vpack.c.bf16 %v972_v19, %v972_v19  ;;  %v728_v11 = vunpack.c.l.bf16 %v2849_v7 }
 0x17b   :  { %2169 = vrcp.f32 %v1343_v25  ;;  %v392_v4 = vmul.f32 1.442695, %v329_v38  ;;  %1912 = vmatmul.msk.bf16.gmra.mxu1 %vm896_vm1, %v855_v46  ;;  %v975_v52 = vadd.f32 %v2700_v36, %v974_v14  ;;  %v456_v44 = vunpack.c.l.bf16 %v424_v15 }
 0x17c   :  { %2171 = vrcp.f32 %v1344_v29  ;;  %v1230_v27 = vunpack.c.l.bf16 %v1198_v18  ;;  %v1073_v45 = vxor.u32 2147516416, %v2857_v48  ;;  %v804_v28 = vunpack.c.l.bf16 %v698_v12 }
 0x17d   :  { %v2164_v50 = vpop.eup %2163  ;;  %v1342_v54 = vpack.c.bf16 %v1339_v2, %v1341_v23  ;;  %2173 = vpow2.f32 %v1142_v33  ;;  %v2863_v37 = vpack.c.bf16 %v975_v52, %v975_v52  ;;  %v773_v3 = vunpack.c.l.bf16 %v2780_v53 }
 0x17e   :  { %v2166_v32 = vpop.eup %2165  ;;  %2175 = vrcp.f32 %v727_v39  ;;  %v1262_v10 = vadd.f32 1.0, %v1230_v27  ;;  %v1199_v56 = vpack.c.bf16 %v2164_v50, %v2164_v50  ;;  %v1105_v34 = vunpack.c.l.bf16 %v1073_v45 }
 0x17f   :  { %v2168_v57 = vpop.eup %2167  ;;  %v702_v14 = vmul.f32 %v2166_v32, %v2523_v20  ;;  %2177 = vpow2.f32 %v392_v4  ;;  %v1074_v15 = vxor.u32 2147516416, %v2863_v37  ;;  %v488_v60 = vadd.f32 1.0, %v456_v44 }
 0x180   :  { %v704_v62 = vmul.f32 %v2168_v57, %v2525_v21  ;;  %v1294_v42 = vpack.c.bf16 %v1262_v10, %v1262_v10  ;;  %v1231_v55 = vunpack.c.l.bf16 %v1199_v56  ;;  %v836_v41 = vmul.f32 %v804_v28, %v772_v8 }
 0x181   :  { %v976_v40 = vpop.f32.mrf.mxu1  ;;  %v2170_v5 = vpop.eup %2169  ;;  %v1580_v9 = vunpack.c.l.bf16 %v1342_v54  ;;  %v1144_v53 = vmul.f32 1.442695, %v1105_v34  ;;  %v1106_v12 = vunpack.c.l.bf16 %v1074_v15  ;;  %v1549_v45 = vunpack.c.l.bf16 %v2796_v43 }
 0x182   :  { %v2172_v61 = vpop.eup %2171  ;;  %v705_v26 = vpack.c.bf16 %v702_v14, %v704_v62  ;;  %v1346_v38 = vmul.f32 %v2170_v5, %v2523_v20  ;;  %v1350_v59 = vunpack.c.h.bf16 %v1294_v42  ;;  %v1351_v35 = vunpack.c.l.bf16 %v1294_v42 }
 0x183   :  { %v2174_v46 = vpop.eup %2173  ;;  %v1348_v2 = vmul.f32 %v2172_v61, %v2525_v21  ;;  %v1263_v19 = vadd.f32 1.0, %v1231_v55  ;;  %2179 = vpow2.f32 %v1144_v53  ;;  %v1146_v22 = vmul.f32 1.442695, %v1106_v12 }
 0x184   :  { %v2873_v25 = vpop.eup %2175  ;;  %v805_v0 = vunpack.c.l.bf16 %v705_v26  ;;  %2181 = vrcp.f32 %v1350_v59  ;;  %v1200_v8 = vpack.c.bf16 %v2174_v46, %v2174_v46  ;;  %v977_v29 = vadd.f32 %v2700_v36, %v976_v40 }
 0x185   :  { %v2178_v39 = vpop.eup %2177  ;;  %v1349_v18 = vpack.c.bf16 %v1346_v38, %v1348_v2  ;;  %2183 = vrcp.f32 %v1351_v35  ;;  %v1295_v33 = vpack.c.bf16 %v1263_v19, %v1263_v19  ;;  %v1612_v14 = vmul.f32 %v1580_v9, %v1548_v63 }
 0x186   :  { %v837_v52 = vmul.f32 %v805_v0, %v773_v3  ;;  %v1232_v44 = vunpack.c.l.bf16 %v1200_v8  ;;  %2185 = vpow2.f32 %v1146_v22  ;;  %v2877_v27 = vpack.c.bf16 %v977_v29, %v977_v29 }
 0x187   :  { %v1581_v50 = vunpack.c.l.bf16 %v1349_v18  ;;  %v1357_v28 = vunpack.c.h.bf16 %v1295_v33  ;;  %v1358_v54 = vunpack.c.l.bf16 %v1295_v33  ;;  %v425_v10 = vpack.c.bf16 %v2178_v39, %v2178_v39 }
 0x188   :  { %v856_v32 = vpack.c.bf16 %v837_v52, %v836_v41  ;;  %v1264_v56 = vadd.f32 1.0, %v1232_v44  ;;  %v1075_v40 = vxor.u32 2147516416, %v2877_v27  ;;  %v2885_v62 = vpack.c.bf16 %v488_v60, %v488_v60 }
 0x189   :  { %v979_v23 = vpop.f32.mrf.mxu1  ;;  %v2180_v57 = vpop.eup %2179  ;;  %v1613_v34 = vmul.f32 %v1581_v50, %v1549_v45  ;;  %2187 = vrcp.f32 %v1357_v28  ;;  %v457_v9 = vunpack.c.l.bf16 %v425_v10  ;;  %v2896_v46 = vmul.f32 %v2822_v17, %v2523_v20 }
 0x18a   :  { %v980_v4 = vadd.f32 %v2700_v36, %v979_v23  ;;  %v2182_v15 = vpop.eup %2181  ;;  %2189 = vrcp.f32 %v1358_v54  ;;  %v1296_v43 = vpack.c.bf16 %v1264_v56, %v1264_v56  ;;  %v1201_v42 = vpack.c.bf16 %v2180_v57, %v2180_v57  ;;  %1913 = vmatmul.msk.bf16.vlgmr.msrb.gmra.mxu3 %vm896_vm1, %v856_v32 }
 0x18b   :  { %v2184_v55 = vpop.eup %2183  ;;  %v1353_v5 = vmul.f32 %v2182_v15, %v2523_v20  ;;  %v1643_v41 = vpack.c.bf16 %v1613_v34, %v1612_v14  ;;  %v1107_v53 = vunpack.c.l.bf16 %v1075_v40  ;;  %2191 = vrcp.f32 %v728_v11 }
 0x18c   :  { %v2883_v3 = vpack.c.bf16 %v980_v4, %v980_v4  ;;  %v2186_v63 = vpop.eup %2185  ;;  %v1355_v60 = vmul.f32 %v2184_v55, %v2525_v21  ;;  %v1364_v12 = vunpack.c.h.bf16 %v1296_v43  ;;  %v1233_v26 = vunpack.c.l.bf16 %v1201_v42 }
 0x18d   :  { %v1202_v38 = vpack.c.bf16 %v2186_v63, %v2186_v63  ;;  %1930 = vmatmul.msk.bf16.gmra.mxu2 %vm1686_vm2, %v1643_v41  ;;  %v1148_v59 = vmul.f32 1.442695, %v1107_v53  ;;  %v2900_v2 = vmul.f32 %v2840_v16, %v2525_v21  ;;  %v1365_v11 = vunpack.c.l.bf16 %v1296_v43 }
 0x18e   :  { %v1076_v30 = vxor.u32 2147516416, %v2883_v3  ;;  %v1356_v7 = vpack.c.bf16 %v1353_v5, %v1355_v60  ;;  %v734_v22 = vunpack.c.h.bf16 %v2885_v62  ;;  %v1265_v23 = vadd.f32 1.0, %v1233_v26 }
 0x18f   :  { %v2188_v19 = vpop.eup %2187  ;;  %v1234_v0 = vunpack.c.l.bf16 %v1202_v38  ;;  %v489_v39 = vadd.f32 1.0, %v457_v9  ;;  %2193 = vpow2.f32 %v1148_v59  ;;  %v2907_v33 = vmul.f32 %v2873_v25, %v2523_v20 }
 0x190   :  { %v1108_v35 = vunpack.c.l.bf16 %v1076_v30  ;;  %v2190_v29 = vpop.eup %2189  ;;  %v1360_v18 = vmul.f32 %v2188_v19, %v2523_v20  ;;  %2195 = vrcp.f32 %v1364_v12  ;;  %v1297_v4 = vpack.c.bf16 %v1265_v23, %v1265_v23 }
 0x191   :  { %v981_v61 = vpop.f32.mrf.mxu1  ;;  %v1362_v16 = vmul.f32 %v2190_v29, %v2525_v21  ;;  %v2192_v52 = vpop.eup %2191  ;;  %v1582_v44 = vunpack.c.l.bf16 %v1356_v7  ;;  %2197 = vrcp.f32 %v1365_v11  ;;  %v1266_v45 = vadd.f32 1.0, %v1234_v0 }
 0x192   :  { %v1150_v8 = vmul.f32 1.442695, %v1108_v35  ;;  %v982_v17 = vadd.f32 %v2700_v36, %v981_v61  ;;  %v1371_v54 = vunpack.c.h.bf16 %v1297_v4  ;;  %v1372_v32 = vunpack.c.l.bf16 %v1297_v4 }
 0x193   :  { %v1363_v28 = vpack.c.bf16 %v1360_v18, %v1362_v16  ;;  %v735_v10 = vunpack.c.l.bf16 %v2885_v62  ;;  %v521_v56 = vpack.c.bf16 %v489_v39, %v489_v39  ;;  %v1550_v57 = vunpack.c.l.bf16 %v2819_v13 }
 0x194   :  { %v2910_v50 = vpack.c.bf16 %v982_v17, %v982_v17  ;;  %2199 = vpow2.f32 %v1150_v8  ;;  %v1551_v14 = vunpack.c.l.bf16 %v2830_v24  ;;  %v732_v43 = vmul.f32 %v2192_v52, %v2525_v21 }
 0x195   :  { %2201 = vrcp.f32 %v734_v22  ;;  %v1583_v34 = vunpack.c.l.bf16 %v1363_v28  ;;  %v2194_v15 = vpop.eup %2193  ;;  %v1298_v42 = vpack.c.bf16 %v1266_v45, %v1266_v45  ;;  %v1614_v41 = vmul.f32 %v1582_v44, %v1550_v57 }
 0x196   :  { %v1077_v25 = vxor.u32 2147516416, %v2910_v50  ;;  %2203 = vrcp.f32 %v1371_v54  ;;  %v2196_v5 = vpop.eup %2195  ;;  %v1203_v53 = vpack.c.bf16 %v2194_v15, %v2194_v15  ;;  %v741_v9 = vunpack.c.h.bf16 %v521_v56 }
 0x197   :  { %2205 = vrcp.f32 %v1372_v32  ;;  %v1615_v62 = vmul.f32 %v1583_v34, %v1551_v14  ;;  %v2198_v63 = vpop.eup %2197  ;;  %v857_v13 = vpack.c.bf16 %v2793_v58, %v2790_v6  ;;  %v742_v12 = vunpack.c.l.bf16 %v521_v56 }
 0x198   :  { %v1109_v55 = vunpack.c.l.bf16 %v1077_v25  ;;  %2207 = vrcp.f32 %v735_v10  ;;  %v1235_v61 = vunpack.c.l.bf16 %v1203_v53  ;;  %v726_v35 = vpack.c.bf16 %v2896_v46, %v2900_v2 }
 0x199   :  { %v984_v40 = vpop.f32.mrf.mxu1  ;;  %v1644_v26 = vpack.c.bf16 %v1615_v62, %v1614_v41  ;;  %v733_v7 = vpack.c.bf16 %v2907_v33, %v732_v43  ;;  %v1367_v6 = vmul.f32 %v2196_v5, %v2523_v20  ;;  %v1369_v58 = vmul.f32 %v2198_v63, %v2525_v21  ;;  %v2939_v5 = vld [vmem:[%s3279_s4] ss:$0 sm:$0xff] }
 0x19a   :  { %v985_v30 = vadd.f32 %v2700_v36, %v984_v40  ;;  %v1152_v24 = vmul.f32 1.442695, %v1109_v55  ;;  %v2200_v60 = vpop.eup %2199  ;;  %v1378_v36 = vunpack.c.h.bf16 %v1298_v42  ;;  %1914 = vmatmul.msk.bf16.gmra.mxu3 %vm896_vm1, %v857_v13  ;;  %v1267_v19 = vadd.f32 1.0, %v1235_v61 }
 0x19b   :  { %v2202_v59 = vpop.eup %2201  ;;  %v1379_v8 = vunpack.c.l.bf16 %v1298_v42  ;;  %v1204_v46 = vpack.c.bf16 %v2200_v60, %v2200_v60  ;;  %v776_v17 = vunpack.c.l.bf16 %v2706_v49  ;;  %v777_v33 = vunpack.c.l.bf16 %v2716_v1 }
 0x19c   :  { %v2920_v38 = vpack.c.bf16 %v985_v30, %v985_v30  ;;  %2209 = vpow2.f32 %v1152_v24  ;;  %v2204_v11 = vpop.eup %2203  ;;  %v1299_v29 = vpack.c.bf16 %v1267_v19, %v1267_v19  ;;  %v1370_v16 = vpack.c.bf16 %v1367_v6, %v1369_v58 }
 0x19d   :  { %v2206_v23 = vpop.eup %2205  ;;  %2211 = vrcp.f32 %v741_v9  ;;  %v1374_v0 = vmul.f32 %v2204_v11, %v2523_v20  ;;  %1931 = vmatmul.msk.bf16.gmra.mxu2 %vm1686_vm2, %v1644_v26  ;;  %v808_v28 = vunpack.c.l.bf16 %v726_v35  ;;  %v809_v54 = vunpack.c.l.bf16 %v733_v7 }
 0x19e   :  { %v1078_v22 = vxor.u32 2147516416, %v2920_v38  ;;  %2213 = vrcp.f32 %v742_v12  ;;  %v1376_v2 = vmul.f32 %v2206_v23, %v2525_v21  ;;  %v2208_v18 = vpop.eup %2207  ;;  %v1385_v52 = vunpack.c.h.bf16 %v1299_v29 }
 0x19f   :  { %2215 = vrcp.f32 %v1378_v36  ;;  %v1386_v44 = vunpack.c.l.bf16 %v1299_v29  ;;  %v1236_v32 = vunpack.c.l.bf16 %v1204_v46  ;;  %v1584_v49 = vunpack.c.l.bf16 %v1370_v16 }
 0x1a0   :  { %v1110_v39 = vunpack.c.l.bf16 %v1078_v22  ;;  %v1377_v4 = vpack.c.bf16 %v1374_v0, %v1376_v2  ;;  %2217 = vrcp.f32 %v1379_v8  ;;  %v1553_v1 = vunpack.c.l.bf16 %v2857_v48 }
 0x1a1   :  { %2219 = vrcp.f32 %v1385_v52  ;;  %v986_v34 = vpop.f32.mrf.mxu1  ;;  %v840_v43 = vmul.f32 %v808_v28, %v776_v17  ;;  %v841_v42 = vmul.f32 %v809_v54, %v777_v33  ;;  %v1552_v55 = vunpack.c.l.bf16 %v2845_v51 }
 0x1a2   :  { %v2210_v45 = vpop.eup %2209  ;;  %v1585_v10 = vunpack.c.l.bf16 %v1377_v4  ;;  %v1154_v25 = vmul.f32 1.442695, %v1110_v39  ;;  %2221 = vrcp.f32 %v1386_v44  ;;  %v987_v41 = vadd.f32 %v2939_v5, %v986_v34 }
 0x1a3   :  { %v1205_v56 = vpack.c.bf16 %v2210_v45, %v2210_v45  ;;  %v2212_v40 = vpop.eup %2211  ;;  %v1268_v53 = vadd.f32 1.0, %v1236_v32  ;;  %v737_v48 = vmul.f32 %v2202_v59, %v2523_v20  ;;  %v739_v9 = vmul.f32 %v2208_v18, %v2525_v21 }
 0x1a4   :  { %v2214_v57 = vpop.eup %2213  ;;  %v1617_v62 = vmul.f32 %v1585_v10, %v1553_v1  ;;  %2223 = vpow2.f32 %v1154_v25  ;;  %v2944_v13 = vpack.c.bf16 %v987_v41, %v987_v41  ;;  %v744_v51 = vmul.f32 %v2212_v40, %v2523_v20 }
 0x1a5   :  { %v1237_v14 = vunpack.c.l.bf16 %v1205_v56  ;;  %v2216_v15 = vpop.eup %2215  ;;  %v746_v60 = vmul.f32 %v2214_v57, %v2525_v21  ;;  %v1616_v12 = vmul.f32 %v1584_v49, %v1552_v55  ;;  %v858_v7 = vpack.c.bf16 %v841_v42, %v840_v43 }
 0x1a6   :  { %v2218_v63 = vpop.eup %2217  ;;  %v1079_v36 = vxor.u32 2147516416, %v2944_v13  ;;  %v1300_v59 = vpack.c.bf16 %v1268_v53, %v1268_v53  ;;  %v1381_v58 = vmul.f32 %v2216_v15, %v2523_v20  ;;  %v740_v0 = vpack.c.bf16 %v737_v48, %v739_v9 }
 0x1a7   :  { %v1269_v30 = vadd.f32 1.0, %v1237_v14  ;;  %v2220_v24 = vpop.eup %2219  ;;  %v1645_v6 = vpack.c.bf16 %v1617_v62, %v1616_v12  ;;  %v1383_v19 = vmul.f32 %v2218_v63, %v2525_v21  ;;  %v747_v8 = vpack.c.bf16 %v744_v51, %v746_v60 }
 0x1a8   :  { %v2222_v26 = vpop.eup %2221  ;;  %v1388_v35 = vmul.f32 %v2220_v24, %v2523_v20  ;;  %v1111_v22 = vunpack.c.l.bf16 %v1079_v36  ;;  %v1392_v33 = vunpack.c.h.bf16 %v1300_v59  ;;  %v1393_v52 = vunpack.c.l.bf16 %v1300_v59 }
 0x1a9   :  { %v1301_v61 = vpack.c.bf16 %v1269_v30, %v1269_v30  ;;  %v1390_v11 = vmul.f32 %v2222_v26, %v2525_v21  ;;  %v989_v2 = vpop.f32.mrf.mxu1  ;;  %v1384_v4 = vpack.c.bf16 %v1381_v58, %v1383_v19  ;;  %v778_v45 = vunpack.c.l.bf16 %v2774_v47 }
 0x1aa   :  { %1915 = vmatmul.msk.bf16.gmra.mxu3 %vm896_vm1, %v858_v7  ;;  %v2224_v23 = vpop.eup %2223  ;;  %v1156_v18 = vmul.f32 1.442695, %v1111_v22  ;;  %v990_v17 = vadd.f32 %v2939_v5, %v989_v2  ;;  %v810_v28 = vunpack.c.l.bf16 %v740_v0  ;;  %v779_v54 = vunpack.c.l.bf16 %v2828_v31 }
 0x1ab   :  { %v1399_v46 = vunpack.c.h.bf16 %v1301_v61  ;;  %v1391_v29 = vpack.c.bf16 %v1388_v35, %v1390_v11  ;;  %v1400_v39 = vunpack.c.l.bf16 %v1301_v61  ;;  %v1206_v16 = vpack.c.bf16 %v2224_v23, %v2224_v23 }
 0x1ac   :  { %2225 = vpow2.f32 %v1156_v18  ;;  %v2956_v44 = vpack.c.bf16 %v990_v17, %v990_v17  ;;  %v811_v32 = vunpack.c.l.bf16 %v747_v8  ;;  %v1586_v40 = vunpack.c.l.bf16 %v1384_v4 }
 0x1ad   :  { %1932 = vmatmul.msk.bf16.gmra.mxu2 %vm1686_vm2, %v1645_v6  ;;  %2227 = vrcp.f32 %v1399_v46  ;;  %v1587_v10 = vunpack.c.l.bf16 %v1391_v29  ;;  %v1238_v25 = vunpack.c.l.bf16 %v1206_v16  ;;  %v1555_v57 = vunpack.c.l.bf16 %v2877_v27 }
 0x1ae   :  { %2229 = vrcp.f32 %v1400_v39  ;;  %v1080_v56 = vxor.u32 2147516416, %v2956_v44  ;;  %v842_v1 = vmul.f32 %v810_v28, %v778_v45  ;;  %v1554_v14 = vunpack.c.l.bf16 %v2863_v37 }
 0x1af   :  { %2231 = vrcp.f32 %v1392_v33  ;;  %v843_v15 = vmul.f32 %v811_v32, %v779_v54  ;;  %v1619_v31 = vmul.f32 %v1587_v10, %v1555_v57  ;;  %v1270_v41 = vadd.f32 1.0, %v1238_v25 }
 0x1b0   :  { %2233 = vrcp.f32 %v1393_v52  ;;  %v1112_v49 = vunpack.c.l.bf16 %v1080_v56  ;;  %v1618_v30 = vmul.f32 %v1586_v40, %v1554_v14  ;;  %v1557_v52 = vunpack.c.l.bf16 %v2910_v50 }
 0x1b1   :  { %v991_v47 = vpop.f32.mrf.mxu1  ;;  %v859_v24 = vpack.c.bf16 %v843_v15, %v842_v1  ;;  %v1302_v61 = vpack.c.bf16 %v1270_v41, %v1270_v41  ;;  %v1556_v25 = vunpack.c.l.bf16 %v2883_v3 }
 0x1b2   :  { %v2226_v34 = vpop.eup %2225  ;;  %v1158_v43 = vmul.f32 1.442695, %v1112_v49  ;;  %v992_v42 = vadd.f32 %v2939_v5, %v991_v47  ;;  %v1646_v37 = vpack.c.bf16 %v1619_v31, %v1618_v30 }
 0x1b3   :  { %v2228_v55 = vpop.eup %2227  ;;  %v1207_v62 = vpack.c.bf16 %v2226_v34, %v2226_v34  ;;  %v1406_v22 = vunpack.c.h.bf16 %v1302_v61  ;;  %v1407_v46 = vunpack.c.l.bf16 %v1302_v61 }
 0x1b4   :  { %v2230_v53 = vpop.eup %2229  ;;  %v2964_v63 = vpack.c.bf16 %v992_v42, %v992_v42  ;;  %2235 = vpow2.f32 %v1158_v43  ;;  %v1402_v60 = vmul.f32 %v2228_v55, %v2523_v20 }
 0x1b5   :  { %v2232_v27 = vpop.eup %2231  ;;  %v1239_v48 = vunpack.c.l.bf16 %v1207_v62  ;;  %v1404_v12 = vmul.f32 %v2230_v53, %v2525_v21 }
 0x1b6   :  { %v2234_v9 = vpop.eup %2233  ;;  %v1081_v51 = vxor.u32 2147516416, %v2964_v63  ;;  %v1395_v7 = vmul.f32 %v2232_v27, %v2523_v20 }
 0x1b7   :  { %v1271_v26 = vadd.f32 1.0, %v1239_v48  ;;  %v1397_v36 = vmul.f32 %v2234_v9, %v2525_v21  ;;  %v1405_v19 = vpack.c.bf16 %v1402_v60, %v1404_v12 }
 0x1b8   :  { %v1113_v35 = vunpack.c.l.bf16 %v1081_v51 }
 0x1b9   :  { %v1303_v11 = vpack.c.bf16 %v1271_v26, %v1271_v26  ;;  %v994_v59 = vpop.f32.mrf.mxu1  ;;  %v1398_v29 = vpack.c.bf16 %v1395_v7, %v1397_v36  ;;  %v1589_v17 = vunpack.c.l.bf16 %v1405_v19 }
 0x1ba   :  { %1916 = vmatmul.msk.bf16.gmra.mxu3 %vm896_vm1, %v859_v24  ;;  %v1160_v6 = vmul.f32 1.442695, %v1113_v35  ;;  %v995_v58 = vadd.f32 %v2939_v5, %v994_v59  ;;  %v2236_v8 = vpop.eup %2235 }
 0x1bb   :  { %v1413_v23 = vunpack.c.h.bf16 %v1303_v11  ;;  %v1414_v0 = vunpack.c.l.bf16 %v1303_v11  ;;  %v1208_v39 = vpack.c.bf16 %v2236_v8, %v2236_v8  ;;  %v1588_v4 = vunpack.c.l.bf16 %v1398_v29 }
 0x1bc   :  { %2237 = vpow2.f32 %v1160_v6  ;;  %v2974_v2 = vpack.c.bf16 %v995_v58, %v995_v58  ;;  %v1621_v40 = vmul.f32 %v1589_v17, %v1557_v52 }
 0x1bd   :  { %1933 = vmatmul.msk.bf16.gmra.mxu2 %vm1686_vm2, %v1646_v37  ;;  %2239 = vrcp.f32 %v1413_v23  ;;  %v1240_v33 = vunpack.c.l.bf16 %v1208_v39  ;;  %v1620_v47 = vmul.f32 %v1588_v4, %v1556_v25 }
 0x1be   :  { %2241 = vrcp.f32 %v1414_v0  ;;  %v1082_v18 = vxor.u32 2147516416, %v2974_v2 }
 0x1bf   :  { %2243 = vrcp.f32 %v1406_v22  ;;  %v1272_v54 = vadd.f32 1.0, %v1240_v33  ;;  %v1647_v41 = vpack.c.bf16 %v1621_v40, %v1620_v47  ;;  %v1559_v22 = vunpack.c.l.bf16 %v2944_v13 }
 0x1c0   :  { %2245 = vrcp.f32 %v1407_v46  ;;  %v1114_v16 = vunpack.c.l.bf16 %v1082_v18  ;;  %v1558_v18 = vunpack.c.l.bf16 %v2920_v38 }
 0x1c1   :  { %v996_v45 = vpop.f32.mrf.mxu1  ;;  %v1304_v50 = vpack.c.bf16 %v1272_v54, %v1272_v54 }
 0x1c2   :  { %v2238_v28 = vpop.eup %2237  ;;  %v1162_v32 = vmul.f32 1.442695, %v1114_v16  ;;  %v997_v10 = vadd.f32 %v2939_v5, %v996_v45 }
 0x1c3   :  { %v2240_v56 = vpop.eup %2239  ;;  %v1209_v57 = vpack.c.bf16 %v2238_v28, %v2238_v28  ;;  %v1420_v9 = vunpack.c.h.bf16 %v1304_v50  ;;  %v1421_v26 = vunpack.c.l.bf16 %v1304_v50 }
 0x1c4   :  { %v2242_v49 = vpop.eup %2241  ;;  %2247 = vpow2.f32 %v1162_v32  ;;  %v2980_v1 = vpack.c.bf16 %v997_v10, %v997_v10  ;;  %v1416_v43 = vmul.f32 %v2240_v56, %v2523_v20 }
 0x1c5   :  { %v2244_v14 = vpop.eup %2243  ;;  %v1241_v34 = vunpack.c.l.bf16 %v1209_v57  ;;  %v1418_v42 = vmul.f32 %v2242_v49, %v2525_v21 }
 0x1c6   :  { %v2246_v15 = vpop.eup %2245  ;;  %v1083_v31 = vxor.u32 2147516416, %v2980_v1  ;;  %v1409_v62 = vmul.f32 %v2244_v14, %v2523_v20 }
 0x1c7   :  { %v1273_v55 = vadd.f32 1.0, %v1241_v34  ;;  %v1411_v53 = vmul.f32 %v2246_v15, %v2525_v21  ;;  %v1419_v51 = vpack.c.bf16 %v1416_v43, %v1418_v42 }
 0x1c8   :  { %v1115_v3 = vunpack.c.l.bf16 %v1083_v31 }
 0x1c9   :  { %v1305_v30 = vpack.c.bf16 %v1273_v55, %v1273_v55  ;;  %v1412_v7 = vpack.c.bf16 %v1409_v62, %v1411_v53  ;;  %v1591_v59 = vunpack.c.l.bf16 %v1419_v51 }
 0x1ca   :  { %v2248_v48 = vpop.eup %2247  ;;  %v1164_v24 = vmul.f32 1.442695, %v1115_v3 }
 0x1cb   :  { %v999_v27 = vpop.f32.mrf.mxu1  ;;  %v1427_v60 = vunpack.c.h.bf16 %v1305_v30  ;;  %v1428_v12 = vunpack.c.l.bf16 %v1305_v30  ;;  %v1210_v61 = vpack.c.bf16 %v2248_v48, %v2248_v48  ;;  %v1590_v19 = vunpack.c.l.bf16 %v1412_v7 }
 0x1cc   :  { %v1000_v37 = vadd.f32 %v2939_v5, %v999_v27  ;;  %2249 = vpow2.f32 %v1164_v24  ;;  %v1623_v17 = vmul.f32 %v1591_v59, %v1559_v22  ;;  %v1561_v30 = vunpack.c.l.bf16 %v2964_v63 }
 0x1cd   :  { %1934 = vmatmul.msk.bf16.gmra.mxu2 %vm1686_vm2, %v1647_v41  ;;  %2251 = vrcp.f32 %v1427_v60  ;;  %v1242_v36 = vunpack.c.l.bf16 %v1210_v61  ;;  %v1622_v45 = vmul.f32 %v1590_v19, %v1558_v18 }
 0x1ce   :  { %v2989_v35 = vpack.c.bf16 %v1000_v37, %v1000_v37  ;;  %2253 = vrcp.f32 %v1428_v12 }
 0x1cf   :  { %2255 = vrcp.f32 %v1420_v9  ;;  %v1274_v6 = vadd.f32 1.0, %v1242_v36  ;;  %v1648_v40 = vpack.c.bf16 %v1623_v17, %v1622_v45  ;;  %v1560_v9 = vunpack.c.l.bf16 %v2956_v44 }
 0x1d0   :  { %v1084_v11 = vxor.u32 2147516416, %v2989_v35  ;;  %2257 = vrcp.f32 %v1421_v26 }
 0x1d1   :  { %v1306_v8 = vpack.c.bf16 %v1274_v6, %v1274_v6 }
 0x1d2   :  { %v1116_v58 = vunpack.c.l.bf16 %v1084_v11  ;;  %v2250_v0 = vpop.eup %2249 }
 0x1d3   :  { %v1001_v23 = vpop.f32.mrf.mxu1  ;;  %v2252_v39 = vpop.eup %2251  ;;  %v1211_v33 = vpack.c.bf16 %v2250_v0, %v2250_v0  ;;  %v1434_v13 = vunpack.c.h.bf16 %v1306_v8  ;;  %v1435_v34 = vunpack.c.l.bf16 %v1306_v8 }
 0x1d4   :  { %v1166_v46 = vmul.f32 1.442695, %v1116_v58  ;;  %v1002_v29 = vadd.f32 %v2939_v5, %v1001_v23  ;;  %v2254_v16 = vpop.eup %2253  ;;  %v1430_v10 = vmul.f32 %v2252_v39, %v2523_v20 }
 0x1d5   :  { %v2256_v52 = vpop.eup %2255  ;;  %v1243_v28 = vunpack.c.l.bf16 %v1211_v33  ;;  %v1432_v56 = vmul.f32 %v2254_v16, %v2525_v21 }
 0x1d6   :  { %2259 = vpow2.f32 %v1166_v46  ;;  %v2995_v4 = vpack.c.bf16 %v1002_v29, %v1002_v29  ;;  %v2258_v54 = vpop.eup %2257  ;;  %v1423_v57 = vmul.f32 %v2256_v52, %v2523_v20 }
 0x1d7   :  { %v1275_v25 = vadd.f32 1.0, %v1243_v28  ;;  %v1425_v49 = vmul.f32 %v2258_v54, %v2525_v21  ;;  %2261 = vrcp.f32 %v1434_v13  ;;  %v1433_v50 = vpack.c.bf16 %v1430_v10, %v1432_v56 }
 0x1d8   :  { %v1085_v32 = vxor.u32 2147516416, %v2995_v4  ;;  %v1563_v13 = vunpack.c.l.bf16 %v2980_v1  ;;  %v1562_v10 = vunpack.c.l.bf16 %v2974_v2  ;;  %v3026_v2 = vld [vmem:[%s3281_s6] ss:$0 sm:$0xff] }
 0x1d9   :  { %v1307_v14 = vpack.c.bf16 %v1275_v25, %v1275_v25  ;;  %v1426_v55 = vpack.c.bf16 %v1423_v57, %v1425_v49  ;;  %v1593_v41 = vunpack.c.l.bf16 %v1433_v50 }
 0x1da   :  { %v1117_v38 = vunpack.c.l.bf16 %v1085_v32 }
 0x1db   :  { %v1441_v31 = vunpack.c.h.bf16 %v1307_v14  ;;  %v1442_v43 = vunpack.c.l.bf16 %v1307_v14  ;;  %v1592_v53 = vunpack.c.l.bf16 %v1426_v55  ;;  %v1625_v24 = vmul.f32 %v1593_v41, %v1561_v30 }
 0x1dc   :  { %v2260_v47 = vpop.eup %2259  ;;  %v1168_v15 = vmul.f32 1.442695, %v1117_v38 }
 0x1dd   :  { %v1212_v42 = vpack.c.bf16 %v2260_v47, %v2260_v47  ;;  %1935 = vmatmul.msk.bf16.gmra.mxu2 %vm1686_vm2, %v1648_v40  ;;  %v2262_v62 = vpop.eup %2261  ;;  %v1624_v61 = vmul.f32 %v1592_v53, %v1560_v9 }
 0x1de   :  { %2263 = vpow2.f32 %v1168_v15  ;;  %v1437_v19 = vmul.f32 %v2262_v62, %v2523_v20 }
 0x1df   :  { %2265 = vrcp.f32 %v1441_v31  ;;  %v1244_v3 = vunpack.c.l.bf16 %v1212_v42  ;;  %v1649_v58 = vpack.c.bf16 %v1625_v24, %v1624_v61 }
 0x1e0   :  { %2267 = vrcp.f32 %v1442_v43 }
 0x1e1   :  { %2269 = vrcp.f32 %v1435_v34  ;;  %v1276_v37 = vadd.f32 1.0, %v1244_v3 }
 0x1e3   :  { %v1308_v59 = vpack.c.bf16 %v1276_v37, %v1276_v37 }
 0x1e4   :  { %v2264_v27 = vpop.eup %2263 }
 0x1e5   :  { %v2266_v48 = vpop.eup %2265  ;;  %v1213_v51 = vpack.c.bf16 %v2264_v27, %v2264_v27  ;;  %v1448_v8 = vunpack.c.h.bf16 %v1308_v59  ;;  %v1449_v17 = vunpack.c.l.bf16 %v1308_v59 }
 0x1e6   :  { %v2268_v60 = vpop.eup %2267  ;;  %v1444_v7 = vmul.f32 %v2266_v48, %v2523_v20 }
 0x1e7   :  { %v2270_v12 = vpop.eup %2269  ;;  %v1245_v26 = vunpack.c.l.bf16 %v1213_v51  ;;  %v1446_v36 = vmul.f32 %v2268_v60, %v2525_v21 }
 0x1e8   :  { %v1004_v11 = vpop.f32.mrf.mxu1  ;;  %v1439_v44 = vmul.f32 %v2270_v12, %v2525_v21 }
 0x1e9   :  { %v1277_v6 = vadd.f32 1.0, %v1245_v26  ;;  %v1005_v63 = vadd.f32 %v2939_v5, %v1004_v11  ;;  %v1447_v0 = vpack.c.bf16 %v1444_v7, %v1446_v36 }
 0x1ea   :  { %v1440_v18 = vpack.c.bf16 %v1437_v19, %v1439_v44  ;;  %v1564_v44 = vunpack.c.l.bf16 %v2989_v35 }
 0x1eb   :  { %v1309_v22 = vpack.c.bf16 %v1277_v6, %v1277_v6  ;;  %v3010_v23 = vpack.c.bf16 %v1005_v63, %v1005_v63  ;;  %v1595_v16 = vunpack.c.l.bf16 %v1447_v0 }
 0x1ec   :  { %v1594_v54 = vunpack.c.l.bf16 %v1440_v18 }
 0x1ed   :  { %v1455_v46 = vunpack.c.h.bf16 %v1309_v22  ;;  %v1456_v29 = vunpack.c.l.bf16 %v1309_v22  ;;  %v1086_v39 = vxor.u32 2147516416, %v3010_v23  ;;  %1936 = vmatmul.msk.bf16.gmra.mxu2 %vm1686_vm2, %v1649_v58  ;;  %v1627_v56 = vmul.f32 %v1595_v16, %v1563_v13 }
 0x1ee   :  { %v1626_v57 = vmul.f32 %v1594_v54, %v1562_v10  ;;  %v1565_v58 = vunpack.c.l.bf16 %v2995_v4 }
 0x1ef   :  { %2271 = vrcp.f32 %v1455_v46  ;;  %v1118_v33 = vunpack.c.l.bf16 %v1086_v39 }
 0x1f0   :  { %2273 = vrcp.f32 %v1456_v29  ;;  %v1006_v52 = vpop.f32.mrf.mxu1  ;;  %v1650_v15 = vpack.c.bf16 %v1627_v56, %v1626_v57 }
 0x1f1   :  { %2275 = vrcp.f32 %v1448_v8  ;;  %v1170_v45 = vmul.f32 1.442695, %v1118_v33  ;;  %v1007_v28 = vadd.f32 %v2939_v5, %v1006_v52 }
 0x1f2   :  { %2277 = vrcp.f32 %v1449_v17 }
 0x1f3   :  { %2279 = vpow2.f32 %v1170_v45  ;;  %v3016_v32 = vpack.c.bf16 %v1007_v28, %v1007_v28 }
 0x1f5   :  { %v2272_v25 = vpop.eup %2271  ;;  %v1087_v40 = vxor.u32 2147516416, %v3016_v32 }
 0x1f6   :  { %v2274_v38 = vpop.eup %2273  ;;  %v1458_v1 = vmul.f32 %v2272_v25, %v2523_v20 }
 0x1f7   :  { %v2276_v49 = vpop.eup %2275  ;;  %v1119_v14 = vunpack.c.l.bf16 %v1087_v40  ;;  %v1460_v31 = vmul.f32 %v2274_v38, %v2525_v21 }
 0x1f8   :  { %v2278_v47 = vpop.eup %2277  ;;  %v1009_v34 = vpop.f32.mrf.mxu1  ;;  %v1451_v41 = vmul.f32 %v2276_v49, %v2523_v20 }
 0x1f9   :  { %v2280_v50 = vpop.eup %2279  ;;  %v1172_v43 = vmul.f32 1.442695, %v1119_v14  ;;  %v1010_v42 = vadd.f32 %v2939_v5, %v1009_v34  ;;  %v1453_v3 = vmul.f32 %v2278_v47, %v2525_v21  ;;  %v1461_v27 = vpack.c.bf16 %v1458_v1, %v1460_v31 }
 0x1fa   :  { %v1214_v55 = vpack.c.bf16 %v2280_v50, %v2280_v50  ;;  %v1744_v30 = vpop.f32.mrf.mxu2 }
 0x1fb   :  { %2281 = vpow2.f32 %v1172_v43  ;;  %v3030_v62 = vpack.c.bf16 %v1010_v42, %v1010_v42  ;;  %v1745_v9 = vadd.f32 %v3026_v2, %v1744_v30  ;;  %v1454_v37 = vpack.c.bf16 %v1451_v41, %v1453_v3 }
 0x1fc   :  { %v1246_v53 = vunpack.c.l.bf16 %v1214_v55  ;;  %v1597_v26 = vunpack.c.l.bf16 %v1461_v27 }
 0x1fd   :  { %v1088_v48 = vxor.u32 2147516416, %v3030_v62  ;;  %1937 = vmatmul.msk.bf16.gmra.mxu2 %vm1686_vm2, %v1650_v15  ;;  %1825 = vst.msk [vmem:[%s3282_s7] sm:$0xff] %vm1824_vm3, %v1745_v9  ;;  %v1596_v63 = vunpack.c.l.bf16 %v1454_v37 }
 0x1fe   :  { %v1278_v24 = vadd.f32 1.0, %v1246_v53  ;;  %v1629_v8 = vmul.f32 %v1597_v26, %v1565_v58 }
 0x1ff   :  { %v1120_v51 = vunpack.c.l.bf16 %v1088_v48  ;;  %v1628_v18 = vmul.f32 %v1596_v63, %v1564_v44 }
 0x200   :  { %v1310_v60 = vpack.c.bf16 %v1278_v24, %v1278_v24  ;;  %v1011_v12 = vpop.f32.mrf.mxu1 }
 0x201   :  { %v2282_v61 = vpop.eup %2281  ;;  %v1174_v7 = vmul.f32 1.442695, %v1120_v51  ;;  %v1012_v36 = vadd.f32 %v2939_v5, %v1011_v12  ;;  %v1651_v16 = vpack.c.bf16 %v1629_v8, %v1628_v18 }
 0x202   :  { %v1462_v11 = vunpack.c.h.bf16 %v1310_v60  ;;  %v1463_v59 = vunpack.c.l.bf16 %v1310_v60  ;;  %v1215_v6 = vpack.c.bf16 %v2282_v61, %v2282_v61  ;;  %v1746_v0 = vpop.f32.mrf.mxu2  ;;  %v1566_v60 = vunpack.c.l.bf16 %v3010_v23 }
 0x203   :  { %2283 = vpow2.f32 %v1174_v7  ;;  %v3041_v19 = vpack.c.bf16 %v1012_v36, %v1012_v36  ;;  %v1747_v29 = vadd.f32 %v3026_v2, %v1746_v0  ;;  %v1567_v61 = vunpack.c.l.bf16 %v3016_v32 }
 0x204   :  { %2285 = vrcp.f32 %v1462_v11  ;;  %v1247_v22 = vunpack.c.l.bf16 %v1215_v6 }
 0x205   :  { %2287 = vrcp.f32 %v1463_v59  ;;  %v1089_v46 = vxor.u32 2147516416, %v3041_v19  ;;  %1826 = vst.msk [vmem:[%s3282_s7 + $0x8] sm:$0xff] %vm1824_vm3, %v1747_v29 }
 0x206   :  { %v1279_v39 = vadd.f32 1.0, %v1247_v22 }
 0x207   :  { %v1121_v17 = vunpack.c.l.bf16 %v1089_v46 }
 0x208   :  { %v1311_v4 = vpack.c.bf16 %v1279_v39, %v1279_v39 }
 0x209   :  { %v2284_v33 = vpop.eup %2283  ;;  %v1176_v35 = vmul.f32 1.442695, %v1121_v17 }
 0x20a   :  { %v2286_v52 = vpop.eup %2285  ;;  %v1469_v45 = vunpack.c.h.bf16 %v1311_v4  ;;  %v1470_v28 = vunpack.c.l.bf16 %v1311_v4  ;;  %v1216_v54 = vpack.c.bf16 %v2284_v33, %v2284_v33 }
 0x20b   :  { %v2288_v13 = vpop.eup %2287  ;;  %2289 = vpow2.f32 %v1176_v35  ;;  %v1465_v56 = vmul.f32 %v2286_v52, %v2523_v20 }
 0x20c   :  { %2291 = vrcp.f32 %v1469_v45  ;;  %v1248_v10 = vunpack.c.l.bf16 %v1216_v54  ;;  %v1467_v25 = vmul.f32 %v2288_v13, %v2525_v21 }
 0x20d   :  { %2293 = vrcp.f32 %v1470_v28  ;;  %1938 = vmatmul.msk.bf16.gmra.mxu2 %vm1686_vm2, %v1651_v16  ;;  %v1014_v40 = vpop.f32.mrf.mxu3 }
 0x20e   :  { %v1280_v38 = vadd.f32 1.0, %v1248_v10  ;;  %v1015_v57 = vadd.f32 %v2939_v5, %v1014_v40  ;;  %v1468_v15 = vpack.c.bf16 %v1465_v56, %v1467_v25 }
 0x210   :  { %v1312_v49 = vpack.c.bf16 %v1280_v38, %v1280_v38  ;;  %v3054_v14 = vpack.c.bf16 %v1015_v57, %v1015_v57  ;;  %v1749_v47 = vpop.f32.mrf.mxu2  ;;  %v1598_v27 = vunpack.c.l.bf16 %v1468_v15 }
 0x211   :  { %v2290_v34 = vpop.eup %2289  ;;  %v1750_v50 = vadd.f32 %v3026_v2, %v1749_v47 }
 0x212   :  { %v2292_v1 = vpop.eup %2291  ;;  %v1476_v31 = vunpack.c.h.bf16 %v1312_v49  ;;  %v1477_v43 = vunpack.c.l.bf16 %v1312_v49  ;;  %v1217_v42 = vpack.c.bf16 %v2290_v34, %v2290_v34  ;;  %v1090_v3 = vxor.u32 2147516416, %v3054_v14 }
 0x213   :  { %v2294_v55 = vpop.eup %2293  ;;  %v1472_v41 = vmul.f32 %v2292_v1, %v2523_v20  ;;  %1827 = vst.msk [vmem:[%s3282_s7 + $0x10] sm:$0xff] %vm1824_vm3, %v1750_v50  ;;  %v1630_v59 = vmul.f32 %v1598_v27, %v1566_v60 }
 0x214   :  { %v1474_v53 = vmul.f32 %v2294_v55, %v2525_v21  ;;  %2295 = vrcp.f32 %v1476_v31  ;;  %v1249_v30 = vunpack.c.l.bf16 %v1217_v42  ;;  %v1122_v48 = vunpack.c.l.bf16 %v1090_v3 }
 0x215   :  { %2297 = vrcp.f32 %v1477_v43  ;;  %v1016_v9 = vpop.f32.mrf.mxu3  ;;  %v1568_v31 = vunpack.c.l.bf16 %v3030_v62  ;;  %v1569_v43 = vunpack.c.l.bf16 %v3041_v19 }
 0x216   :  { %v1475_v24 = vpack.c.bf16 %v1472_v41, %v1474_v53  ;;  %v1281_v37 = vadd.f32 1.0, %v1249_v30  ;;  %v1017_v51 = vadd.f32 %v2939_v5, %v1016_v9  ;;  %v1178_v12 = vmul.f32 1.442695, %v1122_v48 }
 0x218   :  { %v1599_v26 = vunpack.c.l.bf16 %v1475_v24  ;;  %v1313_v7 = vpack.c.bf16 %v1281_v37, %v1281_v37  ;;  %v3067_v36 = vpack.c.bf16 %v1017_v51, %v1017_v51  ;;  %v1751_v11 = vpop.f32.mrf.mxu2  ;;  %2299 = vpow2.f32 %v1178_v12 }
 0x219   :  { %v1752_v6 = vadd.f32 %v3026_v2, %v1751_v11 }
 0x21a   :  { %v2296_v63 = vpop.eup %2295  ;;  %v1631_v58 = vmul.f32 %v1599_v26, %v1567_v61  ;;  %v1483_v44 = vunpack.c.h.bf16 %v1313_v7  ;;  %v1484_v22 = vunpack.c.l.bf16 %v1313_v7  ;;  %v1091_v0 = vxor.u32 2147516416, %v3067_v36 }
 0x21b   :  { %v2298_v8 = vpop.eup %2297  ;;  %1828 = vst.msk [vmem:[%s3282_s7 + $0x18] sm:$0xff] %vm1824_vm3, %v1752_v6  ;;  %v1479_v46 = vmul.f32 %v2296_v63, %v2523_v20 }
 0x21c   :  { %2301 = vrcp.f32 %v1483_v44  ;;  %v1123_v23 = vunpack.c.l.bf16 %v1091_v0  ;;  %v1652_v32 = vpack.c.bf16 %v1631_v58, %v1630_v59  ;;  %v1481_v29 = vmul.f32 %v2298_v8, %v2525_v21 }
 0x21d   :  { %2303 = vrcp.f32 %v1484_v22  ;;  %v1019_v39 = vpop.f32.mrf.mxu3 }
 0x21e   :  { %v1180_v18 = vmul.f32 1.442695, %v1123_v23  ;;  %1939 = vmatmul.msk.bf16.gmra.mxu2 %vm1686_vm2, %v1652_v32  ;;  %v1020_v17 = vadd.f32 %v2939_v5, %v1019_v39  ;;  %v2300_v4 = vpop.eup %2299  ;;  %v1482_v52 = vpack.c.bf16 %v1479_v46, %v1481_v29 }
 0x21f   :  { %v1218_v33 = vpack.c.bf16 %v2300_v4, %v2300_v4 }
 0x220   :  { %2305 = vpow2.f32 %v1180_v18  ;;  %v3079_v35 = vpack.c.bf16 %v1020_v17, %v1020_v17  ;;  %v1754_v16 = vpop.f32.mrf.mxu2  ;;  %v1600_v57 = vunpack.c.l.bf16 %v1482_v52 }
 0x221   :  { %v1755_v45 = vadd.f32 %v3026_v2, %v1754_v16  ;;  %v1250_v54 = vunpack.c.l.bf16 %v1218_v33 }
 0x222   :  { %v2302_v28 = vpop.eup %2301  ;;  %v1092_v13 = vxor.u32 2147516416, %v3079_v35  ;;  %v1632_v9 = vmul.f32 %v1600_v57, %v1568_v31  ;;  %v1571_v31 = vunpack.c.l.bf16 %v3067_v36 }
 0x223   :  { %v2304_v10 = vpop.eup %2303  ;;  %v1486_v56 = vmul.f32 %v2302_v28, %v2523_v20  ;;  %1829 = vst.msk [vmem:[%s3282_s7 + $0x20] sm:$0xff] %vm1824_vm3, %v1755_v45  ;;  %v1282_v40 = vadd.f32 1.0, %v1250_v54 }
 0x224   :  { %v1488_v25 = vmul.f32 %v2304_v10, %v2525_v21  ;;  %v1124_v38 = vunpack.c.l.bf16 %v1092_v13 }
 0x225   :  { %v1021_v49 = vpop.f32.mrf.mxu3  ;;  %v1314_v15 = vpack.c.bf16 %v1282_v40, %v1282_v40 }
 0x226   :  { %v2306_v47 = vpop.eup %2305  ;;  %v1489_v34 = vpack.c.bf16 %v1486_v56, %v1488_v25  ;;  %v1182_v50 = vmul.f32 1.442695, %v1124_v38  ;;  %v1022_v1 = vadd.f32 %v2939_v5, %v1021_v49 }
 0x227   :  { %v1219_v42 = vpack.c.bf16 %v2306_v47, %v2306_v47  ;;  %v1490_v41 = vunpack.c.h.bf16 %v1314_v15  ;;  %v1491_v3 = vunpack.c.l.bf16 %v1314_v15 }
 0x228   :  { %v1601_v55 = vunpack.c.l.bf16 %v1489_v34  ;;  %2307 = vpow2.f32 %v1182_v50  ;;  %v1756_v53 = vpop.f32.mrf.mxu2  ;;  %v3092_v27 = vpack.c.bf16 %v1022_v1, %v1022_v1  ;;  %v1570_v1 = vunpack.c.l.bf16 %v3054_v14 }
 0x229   :  { %v1251_v30 = vunpack.c.l.bf16 %v1219_v42  ;;  %v1757_v48 = vadd.f32 %v3026_v2, %v1756_v53  ;;  %2309 = vrcp.f32 %v1490_v41 }
 0x22a   :  { %v1633_v24 = vmul.f32 %v1601_v55, %v1569_v43  ;;  %2311 = vrcp.f32 %v1491_v3  ;;  %v1093_v62 = vxor.u32 2147516416, %v3092_v27 }
 0x22b   :  { %v1283_v37 = vadd.f32 1.0, %v1251_v30  ;;  %1830 = vst.msk [vmem:[%s3282_s7 + $0x28] sm:$0xff] %vm1824_vm3, %v1757_v48 }
 0x22c   :  { %v1653_v19 = vpack.c.bf16 %v1633_v24, %v1632_v9  ;;  %v1125_v60 = vunpack.c.l.bf16 %v1093_v62 }
 0x22d   :  { %v1315_v51 = vpack.c.bf16 %v1283_v37, %v1283_v37  ;;  %v1024_v12 = vpop.f32.mrf.mxu3 }
 0x22e   :  { %v2308_v61 = vpop.eup %2307  ;;  %1940 = vmatmul.msk.bf16.gmra.mxu2 %vm1686_vm2, %v1653_v19  ;;  %v1025_v26 = vadd.f32 %v2939_v5, %v1024_v12  ;;  %v1184_v6 = vmul.f32 1.442695, %v1125_v60 }
 0x22f   :  { %v1497_v7 = vunpack.c.h.bf16 %v1315_v51  ;;  %v1498_v11 = vunpack.c.l.bf16 %v1315_v51  ;;  %v1220_v59 = vpack.c.bf16 %v2308_v61, %v2308_v61  ;;  %v2310_v63 = vpop.eup %2309 }
 0x230   :  { %v3102_v58 = vpack.c.bf16 %v1025_v26, %v1025_v26  ;;  %v1759_v44 = vpop.f32.mrf.mxu2  ;;  %v2312_v22 = vpop.eup %2311  ;;  %v1493_v32 = vmul.f32 %v2310_v63, %v2523_v20 }
 0x231   :  { %2313 = vrcp.f32 %v1497_v7  ;;  %v1252_v0 = vunpack.c.l.bf16 %v1220_v59  ;;  %v1760_v8 = vadd.f32 %v3026_v2, %v1759_v44  ;;  %v1495_v46 = vmul.f32 %v2312_v22, %v2525_v21 }
 0x232   :  { %2315 = vrcp.f32 %v1498_v11  ;;  %v1094_v23 = vxor.u32 2147516416, %v3102_v58 }
 0x233   :  { %v1284_v29 = vadd.f32 1.0, %v1252_v0  ;;  %2317 = vpow2.f32 %v1184_v6  ;;  %1831 = vst.msk [vmem:[%s3282_s7 + $0x30] sm:$0xff] %vm1824_vm3, %v1760_v8  ;;  %v1496_v52 = vpack.c.bf16 %v1493_v32, %v1495_v46 }
 0x234   :  { %v1126_v39 = vunpack.c.l.bf16 %v1094_v23 }
 0x235   :  { %v1316_v18 = vpack.c.bf16 %v1284_v29, %v1284_v29  ;;  %v1026_v17 = vpop.f32.mrf.mxu3  ;;  %v1602_v47 = vunpack.c.l.bf16 %v1496_v52 }
 0x236   :  { %v1186_v4 = vmul.f32 1.442695, %v1126_v39  ;;  %v1027_v33 = vadd.f32 %v2939_v5, %v1026_v17 }
 0x237   :  { %v2314_v16 = vpop.eup %2313  ;;  %v1504_v54 = vunpack.c.h.bf16 %v1316_v18  ;;  %v1505_v40 = vunpack.c.l.bf16 %v1316_v18  ;;  %v1634_v30 = vmul.f32 %v1602_v47, %v1570_v1 }
 0x238   :  { %v2316_v45 = vpop.eup %2315  ;;  %v1500_v28 = vmul.f32 %v2314_v16, %v2523_v20  ;;  %2319 = vpow2.f32 %v1186_v4  ;;  %v3114_v13 = vpack.c.bf16 %v1027_v33, %v1027_v33  ;;  %v1761_v10 = vpop.f32.mrf.mxu2 }
 0x239   :  { %v2318_v56 = vpop.eup %2317  ;;  %v1502_v25 = vmul.f32 %v2316_v45, %v2525_v21  ;;  %v1762_v38 = vadd.f32 %v3026_v2, %v1761_v10  ;;  %2321 = vrcp.f32 %v1504_v54 }
 0x23a   :  { %v1221_v57 = vpack.c.bf16 %v2318_v56, %v2318_v56  ;;  %v1095_v49 = vxor.u32 2147516416, %v3114_v13  ;;  %2323 = vrcp.f32 %v1505_v40 }
 0x23b   :  { %v1503_v34 = vpack.c.bf16 %v1500_v28, %v1502_v25  ;;  %1832 = vst.msk [vmem:[%s3282_s7 + $0x38] sm:$0xff] %vm1824_vm3, %v1762_v38 }
 0x23c   :  { %v1253_v15 = vunpack.c.l.bf16 %v1221_v57  ;;  %v1127_v50 = vunpack.c.l.bf16 %v1095_v49 }
 0x23d   :  { %v1603_v43 = vunpack.c.l.bf16 %v1503_v34  ;;  %v1029_v42 = vpop.f32.mrf.mxu3 }
 0x23e   :  { %v2320_v55 = vpop.eup %2319  ;;  %v1285_v41 = vadd.f32 1.0, %v1253_v15  ;;  %v1188_v3 = vmul.f32 1.442695, %v1127_v50  ;;  %v1030_v53 = vadd.f32 %v2939_v5, %v1029_v42  ;;  %v1572_v15 = vunpack.c.l.bf16 %v3079_v35 }
 0x23f   :  { %v1635_v48 = vmul.f32 %v1603_v43, %v1571_v31  ;;  %v1222_v9 = vpack.c.bf16 %v2320_v55, %v2320_v55  ;;  %v2322_v51 = vpop.eup %2321  ;;  %v1573_v50 = vunpack.c.l.bf16 %v3092_v27 }
 0x240   :  { %v1317_v24 = vpack.c.bf16 %v1285_v41, %v1285_v41  ;;  %2325 = vpow2.f32 %v1188_v3  ;;  %v3126_v37 = vpack.c.bf16 %v1030_v53, %v1030_v53  ;;  %v1764_v62 = vpop.f32.mrf.mxu2  ;;  %v2324_v26 = vpop.eup %2323  ;;  %v1507_v44 = vmul.f32 %v2322_v51, %v2523_v20 }
 0x241   :  { %v1654_v19 = vpack.c.bf16 %v1635_v48, %v1634_v30  ;;  %v1254_v14 = vunpack.c.l.bf16 %v1222_v9  ;;  %v1765_v36 = vadd.f32 %v3026_v2, %v1764_v62  ;;  %v1509_v22 = vmul.f32 %v2324_v26, %v2525_v21 }
 0x242   :  { %v1511_v60 = vunpack.c.h.bf16 %v1317_v24  ;;  %v1512_v12 = vunpack.c.l.bf16 %v1317_v24  ;;  %v1096_v61 = vxor.u32 2147516416, %v3126_v37 }
 0x243   :  { %v1286_v7 = vadd.f32 1.0, %v1254_v14  ;;  %1833 = vst.msk [vmem:[%s3282_s7 + $0x40] sm:$0xff] %vm1824_vm3, %v1765_v36  ;;  %1941 = vmatmul.msk.bf16.vlgmr.msra.gmra.mxu3 %vm1686_vm2, %v1654_v19  ;;  %v1510_v33 = vpack.c.bf16 %v1507_v44, %v1509_v22 }
 0x244   :  { %2327 = vrcp.f32 %v1511_v60  ;;  %v1128_v11 = vunpack.c.l.bf16 %v1096_v61 }
 0x245   :  { %2329 = vrcp.f32 %v1512_v12  ;;  %v1318_v59 = vpack.c.bf16 %v1286_v7, %v1286_v7  ;;  %v1031_v6 = vpop.f32.mrf.mxu3  ;;  %v1604_v25 = vunpack.c.l.bf16 %v1510_v33 }
 0x246   :  { %v2326_v63 = vpop.eup %2325  ;;  %v1190_v0 = vmul.f32 1.442695, %v1128_v11  ;;  %v1032_v8 = vadd.f32 %v2939_v5, %v1031_v6 }
 0x247   :  { %v1518_v23 = vunpack.c.h.bf16 %v1318_v59  ;;  %v1519_v32 = vunpack.c.l.bf16 %v1318_v59  ;;  %v1223_v46 = vpack.c.bf16 %v2326_v63, %v2326_v63  ;;  %v1636_v41 = vmul.f32 %v1604_v25, %v1572_v15 }
 0x248   :  { %2331 = vpow2.f32 %v1190_v0  ;;  %v3138_v29 = vpack.c.bf16 %v1032_v8, %v1032_v8  ;;  %v1766_v39 = vpop.f32.mrf.mxu2  ;;  %v1575_v63 = vunpack.c.l.bf16 %v3114_v13  ;;  %v1574_v0 = vunpack.c.l.bf16 %v3102_v58 }
 0x249   :  { %v1255_v18 = vunpack.c.l.bf16 %v1223_v46  ;;  %v1767_v17 = vadd.f32 %v3026_v2, %v1766_v39  ;;  %2333 = vrcp.f32 %v1518_v23 }
 0x24a   :  { %v2328_v4 = vpop.eup %2327  ;;  %v1097_v16 = vxor.u32 2147516416, %v3138_v29  ;;  %2335 = vrcp.f32 %v1519_v32 }
 0x24b   :  { %v2330_v52 = vpop.eup %2329  ;;  %v1514_v45 = vmul.f32 %v2328_v4, %v2523_v20  ;;  %v1287_v5 = vadd.f32 1.0, %v1255_v18  ;;  %1834 = vst.msk [vmem:[%s3282_s7 + $0x48] sm:$0xff] %vm1824_vm3, %v1767_v17 }
 0x24c   :  { %v1516_v28 = vmul.f32 %v2330_v52, %v2525_v21  ;;  %v1129_v54 = vunpack.c.l.bf16 %v1097_v16 }
 0x24d   :  { %v1319_v10 = vpack.c.bf16 %v1287_v5, %v1287_v5 }
 0x24e   :  { %v2332_v56 = vpop.eup %2331  ;;  %v1517_v40 = vpack.c.bf16 %v1514_v45, %v1516_v28  ;;  %v1192_v38 = vmul.f32 1.442695, %v1129_v54 }
 0x24f   :  { %v1525_v57 = vunpack.c.h.bf16 %v1319_v10  ;;  %v1526_v49 = vunpack.c.l.bf16 %v1319_v10  ;;  %v1224_v47 = vpack.c.bf16 %v2332_v56, %v2332_v56  ;;  %v2334_v34 = vpop.eup %2333 }
 0x250   :  { %v1605_v1 = vunpack.c.l.bf16 %v1517_v40  ;;  %2337 = vpow2.f32 %v1192_v38  ;;  %v1769_v31 = vpop.f32.mrf.mxu2  ;;  %v2336_v43 = vpop.eup %2335  ;;  %v1521_v35 = vmul.f32 %v2334_v34, %v2523_v20  ;;  %v1577_v40 = vunpack.c.l.bf16 %v3138_v29 }
 0x251   :  { %2339 = vrcp.f32 %v1525_v57  ;;  %v1256_v42 = vunpack.c.l.bf16 %v1224_v47  ;;  %v1770_v55 = vadd.f32 %v3026_v2, %v1769_v31  ;;  %v1523_v27 = vmul.f32 %v2336_v43, %v2525_v21 }
 0x252   :  { %v1637_v3 = vmul.f32 %v1605_v1, %v1573_v50  ;;  %2341 = vrcp.f32 %v1526_v49  ;;  %v1576_v57 = vunpack.c.l.bf16 %v3126_v37 }
 0x253   :  { %v1288_v53 = vadd.f32 1.0, %v1256_v42  ;;  %1835 = vst.msk [vmem:[%s3282_s7 + $0x50] sm:$0xff] %vm1824_vm3, %v1770_v55  ;;  %v1524_v51 = vpack.c.bf16 %v1521_v35, %v1523_v27 }
 0x254   :  { %v1655_v30 = vpack.c.bf16 %v1637_v3, %v1636_v41 }
 0x255   :  { %v1320_v48 = vpack.c.bf16 %v1288_v53, %v1288_v53  ;;  %v1606_v6 = vunpack.c.l.bf16 %v1524_v51 }
 0x256   :  { %v2338_v9 = vpop.eup %2337  ;;  %1942 = vmatmul.msk.bf16.gmra.mxu3 %vm1686_vm2, %v1655_v30 }
 0x257   :  { %v2340_v24 = vpop.eup %2339  ;;  %v1532_v62 = vunpack.c.h.bf16 %v1320_v48  ;;  %v1533_v19 = vunpack.c.l.bf16 %v1320_v48  ;;  %v1225_v14 = vpack.c.bf16 %v2338_v9, %v2338_v9  ;;  %v1638_v39 = vmul.f32 %v1606_v6, %v1574_v0 }
 0x258   :  { %v2342_v36 = vpop.eup %2341  ;;  %v1528_v60 = vmul.f32 %v2340_v24, %v2523_v20  ;;  %v1771_v12 = vpop.f32.mrf.mxu2 }
 0x259   :  { %v1530_v61 = vmul.f32 %v2342_v36, %v2525_v21  ;;  %v1257_v26 = vunpack.c.l.bf16 %v1225_v14  ;;  %v1772_v7 = vadd.f32 %v3026_v2, %v1771_v12  ;;  %2343 = vrcp.f32 %v1532_v62 }
 0x25a   :  { %2345 = vrcp.f32 %v1533_v19 }
 0x25b   :  { %v1531_v11 = vpack.c.bf16 %v1528_v60, %v1530_v61  ;;  %v1289_v59 = vadd.f32 1.0, %v1257_v26  ;;  %1836 = vst.msk [vmem:[%s3282_s7 + $0x58] sm:$0xff] %vm1824_vm3, %v1772_v7 }
 0x25d   :  { %v1607_v44 = vunpack.c.l.bf16 %v1531_v11  ;;  %v1321_v22 = vpack.c.bf16 %v1289_v59, %v1289_v59 }
 0x25f   :  { %v1639_v8 = vmul.f32 %v1607_v44, %v1575_v63  ;;  %v1539_v23 = vunpack.c.h.bf16 %v1321_v22  ;;  %v1540_v32 = vunpack.c.l.bf16 %v1321_v22  ;;  %v2344_v46 = vpop.eup %2343 }
 0x260   :  { %v1774_v18 = vpop.f32.mrf.mxu2  ;;  %v2346_v17 = vpop.eup %2345  ;;  %v1535_v13 = vmul.f32 %v2344_v46, %v2523_v20 }
 0x261   :  { %2347 = vrcp.f32 %v1539_v23  ;;  %v1775_v4 = vadd.f32 %v3026_v2, %v1774_v18  ;;  %v1656_v33 = vpack.c.bf16 %v1639_v8, %v1638_v39  ;;  %v1537_v58 = vmul.f32 %v2346_v17, %v2525_v21 }
 0x262   :  { %2349 = vrcp.f32 %v1540_v32 }
 0x263   :  { %1837 = vst.msk [vmem:[%s3282_s7 + $0x60] sm:$0xff] %vm1824_vm3, %v1775_v4  ;;  %v1538_v45 = vpack.c.bf16 %v1535_v13, %v1537_v58 }
 0x265   :  { %v1608_v25 = vunpack.c.l.bf16 %v1538_v45 }
 0x266   :  { %1943 = vmatmul.msk.bf16.gmra.mxu3 %vm1686_vm2, %v1656_v33 }
 0x267   :  { %v2348_v16 = vpop.eup %2347  ;;  %v1640_v47 = vmul.f32 %v1608_v25, %v1576_v57 }
 0x268   :  { %v2350_v52 = vpop.eup %2349  ;;  %v1542_v5 = vmul.f32 %v2348_v16, %v2523_v20  ;;  %v1776_v28 = vpop.f32.mrf.mxu2 }
 0x269   :  { %v1544_v54 = vmul.f32 %v2350_v52, %v2525_v21  ;;  %v1777_v10 = vadd.f32 %v3026_v2, %v1776_v28 }
 0x26b   :  { %v1545_v56 = vpack.c.bf16 %v1542_v5, %v1544_v54  ;;  %1838 = vst.msk [vmem:[%s3282_s7 + $0x68] sm:$0xff] %vm1824_vm3, %v1777_v10 }
 0x26d   :  { %v1609_v38 = vunpack.c.l.bf16 %v1545_v56 }
 0x26f   :  { %v1641_v49 = vmul.f32 %v1609_v38, %v1577_v40 }
 0x270   :  { %v1779_v20 = vpop.f32.mrf.mxu2 }
 0x271   :  { %v1780_v34 = vadd.f32 %v3026_v2, %v1779_v20  ;;  %v1657_v21 = vpack.c.bf16 %v1641_v49, %v1640_v47 }
 0x273   :  { %1839 = vst.msk [vmem:[%s3282_s7 + $0x70] sm:$0xff] %vm1824_vm3, %v1780_v34 }
 0x276   :  { %1944 = vmatmul.msk.bf16.gmra.mxu3 %vm1686_vm2, %v1657_v21 }
 0x278   :  { %v1781_v15 = vpop.f32.mrf.mxu2 }
 0x279   :  { %v1782_v50 = vadd.f32 %v3026_v2, %v1781_v15 }
 0x27b   :  { %1840 = vst.msk [vmem:[%s3282_s7 + $0x78] sm:$0xff] %vm1824_vm3, %v1782_v50 }
 0x280   :  { %v1784_v37 = vpop.f32.mrf.mxu2 }
 0x281   :  { %v1785_v29 = vadd.f32 %v3026_v2, %v1784_v37 }
 0x283   :  { %1841 = vst.msk [vmem:[%s3282_s7 + $0x80] sm:$0xff] %vm1824_vm3, %v1785_v29 }
 0x288   :  { %v1786_v1 = vpop.f32.mrf.mxu2 }
 0x289   :  { %v1787_v31 = vadd.f32 %v3026_v2, %v1786_v1 }
 0x28b   :  { %1842 = vst.msk [vmem:[%s3282_s7 + $0x88] sm:$0xff] %vm1824_vm3, %v1787_v31 }
 0x290   :  { %v1789_v43 = vpop.f32.mrf.mxu2 }
 0x291   :  { %v1790_v42 = vadd.f32 %v3026_v2, %v1789_v43 }
 0x293   :  { %1843 = vst.msk [vmem:[%s3282_s7 + $0x90] sm:$0xff] %vm1824_vm3, %v1790_v42 }
 0x298   :  { %v1791_v55 = vpop.f32.mrf.mxu2 }
 0x299   :  { %v1792_v41 = vadd.f32 %v3026_v2, %v1791_v55 }
 0x29b   :  { %1844 = vst.msk [vmem:[%s3282_s7 + $0x98] sm:$0xff] %vm1824_vm3, %v1792_v41 }
 0x2a1   :  { %v1794_v3 = vpop.f32.mrf.mxu2 }
 0x2a2   :  { %v1795_v53 = vadd.f32 %v3026_v2, %v1794_v3 }
 0x2a4   :  { %1845 = vst.msk [vmem:[%s3282_s7 + $0xa0] sm:$0xff] %vm1824_vm3, %v1795_v53 }
 0x2a9   :  { %v1796_v35 = vpop.f32.mrf.mxu2 }
 0x2aa   :  { %v1797_v27 = vadd.f32 %v3026_v2, %v1796_v35 }
 0x2ac   :  { %1846 = vst.msk [vmem:[%s3282_s7 + $0xa8] sm:$0xff] %vm1824_vm3, %v1797_v27 }
 0x2b1   :  { %v1799_v30 = vpop.f32.mrf.mxu2 }
 0x2b2   :  { %v1800_v48 = vadd.f32 %v3026_v2, %v1799_v30 }
 0x2b4   :  { %1847 = vst.msk [vmem:[%s3282_s7 + $0xb0] sm:$0xff] %vm1824_vm3, %v1800_v48 }
 0x2b9   :  { %v1801_v9 = vpop.f32.mrf.mxu2 }
 0x2ba   :  { %v1802_v24 = vadd.f32 %v3026_v2, %v1801_v9 }
 0x2bc   :  { %1848 = vst.msk [vmem:[%s3282_s7 + $0xb8] sm:$0xff] %vm1824_vm3, %v1802_v24 }
 0x2c6   :  { %v1804_v62 = vpop.f32.mrf.mxu3 }
 0x2c7   :  { %v1805_v19 = vadd.f32 %v3026_v2, %v1804_v62 }
 0x2c9   :  { %1849 = vst.msk [vmem:[%s3282_s7 + $0xc0] sm:$0xff] %vm1824_vm3, %v1805_v19 }
 0x2ce   :  { %v1806_v14 = vpop.f32.mrf.mxu3 }
 0x2cf   :  { %v1807_v36 = vadd.f32 %v3026_v2, %v1806_v14 }
 0x2d1   :  { %1850 = vst.msk [vmem:[%s3282_s7 + $0xc8] sm:$0xff] %vm1824_vm3, %v1807_v36 }
 0x2d9   :  { %v1809_v51 = vpop.f32.mrf.mxu3 }
 0x2da   :  { %v1810_v60 = vadd.f32 %v3026_v2, %v1809_v51 }
 0x2dc   :  { %1851 = vst.msk [vmem:[%s3282_s7 + $0xd0] sm:$0xff] %vm1824_vm3, %v1810_v60 }
 0x2e1   :  { %v1811_v12 = vpop.f32.mrf.mxu3 }
 0x2e2   :  { %v1812_v61 = vadd.f32 %v3026_v2, %v1811_v12 }
 0x2e4   :  { %1852 = vst.msk [vmem:[%s3282_s7 + $0xd8] sm:$0xff] %vm1824_vm3, %v1812_v61 }
 0x2e9   :  { %v1814_v26 = vpop.f32.mrf.mxu3 }
 0x2ea   :  { %v1815_v7 = vadd.f32 %v3026_v2, %v1814_v26 }
 0x2ec   :  { %1853 = vst.msk [vmem:[%s3282_s7 + $0xe0] sm:$0xff] %vm1824_vm3, %v1815_v7 }
 0x2f1   :  { %v1816_v11 = vpop.f32.mrf.mxu3 }
 0x2f2   :  { %v1817_v59 = vadd.f32 %v3026_v2, %v1816_v11 }
 0x2f4   :  { %1854 = vst.msk [vmem:[%s3282_s7 + $0xe8] sm:$0xff] %vm1824_vm3, %v1817_v59 }
 0x2f9   :  { %v1819_v6 = vpop.f32.mrf.mxu3 }
 0x2fa   :  { %v1820_v63 = vadd.f32 %v3026_v2, %v1819_v6 }
 0x2fc   :  { %1855 = vst.msk [vmem:[%s3282_s7 + $0xf0] sm:$0xff] %vm1824_vm3, %v1820_v63 }
 0x301   :  { %v1821_v44 = vpop.f32.mrf.mxu3 }
 0x302   :  { %v1822_v22 = vadd.f32 %v3026_v2, %v1821_v44 }
 0x304   :  { %1856 = vst.msk [vmem:[%s3282_s7 + $0xf8] sm:$0xff] %vm1824_vm3, %v1822_v22 }

</bundles_post_ra>
